<compile_context>
chip_gen: v7x
topology: tpu7x:2x2x1
jax: 0.10.0
libtpu: 0.0.40
codegen_flags: <defaults>
</compile_context>

<pallas_src>
import math

import jax
import jax.numpy as jnp
import numpy as np
from jax.experimental import pallas as pl
from jax.experimental.pallas import tpu as pltpu


# -----------------------------------------------------------------------------
# Fused kernel: 2-layer LSTM (two sequential single-layer passes) + softmax
#               + blank-drop + batched alignment matmul
# -----------------------------------------------------------------------------
def _ctc_fused_kernel(x_ref, wih1_ref, whh1_ref, b1_ref,
                      wih2_ref, whh2_ref, b2_ref, out_ref):
    B, T, D = x_ref.shape
    H = whh1_ref.shape[0]
    bf16 = jnp.bfloat16

    x = x_ref[...]                                             # (B, T, D) f32
    x_tbd = jnp.transpose(x, (1, 0, 2))                        # (T, B, D): one up-front
                                                               # transpose, off the chain

    whh1 = whh1_ref[...]                                       # (H, 4H) bf16
    whh2 = whh2_ref[...]                                       # (H, 4H) bf16
    b2 = b2_ref[...]                                           # (1, 4H) f32

    def gates(g):
        # One sigmoid + one tanh over the full (B,4H) vreg -> 2 EUP dispatches/cell.
        s = jax.nn.sigmoid(g)
        th = jnp.tanh(g)
        return (s[:, 0 * H:1 * H],      # i
                s[:, 1 * H:2 * H],      # f
                th[:, 2 * H:3 * H],     # g
                s[:, 3 * H:4 * H])      # o

    # ---- Pass 1: layer-1.  Hoisted input projection: ONE bulk MXU matmul. ----
    g1_in = (jnp.dot(x_tbd.reshape(T * B, D).astype(bf16), wih1_ref[...],
                     preferred_element_type=jnp.float32)
             + b1_ref[...]).reshape(T, B, 4 * H)               # (T, B, 4H) f32

    h1 = jnp.zeros((B, H), jnp.float32)
    c1 = jnp.zeros((B, H), jnp.float32)
    h1_all = []
    for t in range(T):                                         # T tiny & static: unroll
        g1 = g1_in[t] + jnp.dot(h1.astype(bf16), whh1,
                                preferred_element_type=jnp.float32)
        i1, f1, gg1, o1 = gates(g1)
        c1 = f1 * c1 + i1 * gg1
        h1 = o1 * jnp.tanh(c1)
        h1_all.append(h1)

    # ---- Pass 2: layer-2.  Input projection hoisted off the serial chain too. ----
    h1_stack = jnp.stack(h1_all, axis=0)                       # (T, B, H) f32
    g2_in = (jnp.dot(h1_stack.reshape(T * B, H).astype(bf16), wih2_ref[...],
                     preferred_element_type=jnp.float32)
             + b2).reshape(T, B, 4 * H)                        # (T, B, 4H) f32

    h2 = jnp.zeros((B, H), jnp.float32)
    c2 = jnp.zeros((B, H), jnp.float32)
    h2_all = []
    for t in range(T):
        g2 = g2_in[t] + jnp.dot(h2.astype(bf16), whh2,
                                preferred_element_type=jnp.float32)
        i2, f2, gg2, o2 = gates(g2)
        c2 = f2 * c2 + i2 * gg2
        h2 = o2 * jnp.tanh(c2)
        h2_all.append(h2)

    # ---- Softmax over hidden dim (stable); divide -> approx reciprocal (EUP). ----
    z = jnp.stack(h2_all, axis=1)                              # (B, T, H) f32
    m = jnp.max(z, axis=-1, keepdims=True)
    e = jnp.exp(z - m)
    p = e * pl.reciprocal(jnp.sum(e, axis=-1, keepdims=True), approx=True)

    # ---- Alignment: one batched matmul over T, then drop the blank row. ----
    full = jax.lax.dot_general(
        p, x,
        dimension_numbers=(((1,), (1,)), ((0,), (0,))),        # 'bth,btd->bhd'
        preferred_element_type=jnp.float32)                    # (B, H, D) f32
    out_ref[...] = full[:, 1:, :]                              # (B, S, D), single store


# -----------------------------------------------------------------------------
# Wrapper: single grid-less pallas_call, whole arrays resident in VMEM.
# -----------------------------------------------------------------------------
def ctc_module_forward(x, params):
    """x: (B, T, in_dim) float32 -> (B, out_seq_len, in_dim)."""
    B, T, D = x.shape
    H = params['whh1'].shape[0]            # out_seq_len + 1
    S = H - 1

    return pl.pallas_call(
        _ctc_fused_kernel,
        out_shape=jax.ShapeDtypeStruct((B, S, D), jnp.float32),
        in_specs=[pl.BlockSpec(memory_space=pltpu.MemorySpace.VMEM)] * 7,
        out_specs=pl.BlockSpec(memory_space=pltpu.MemorySpace.VMEM),
    )(x, params['wih1'], params['whh1'], params['b1'],
      params['wih2'], params['whh2'], params['b2'])


# -----------------------------------------------------------------------------
# Deterministic parameter init (matches PyTorch nn.LSTM shapes; U(-1/sqrt(H), 1/sqrt(H)))
# Weights stored pre-transposed and in bf16 (MXU-native); biases f32.
# -----------------------------------------------------------------------------
def init_params(key, in_dim, out_seq_len):
    H = out_seq_len + 1
    bound = 1.0 / math.sqrt(H)
    keys = jax.random.split(key, 8)

    def u(k_, shape):
        return jax.random.uniform(k_, shape, jnp.float32, -bound, bound)

    wih1 = u(keys[0], (4 * H, in_dim))
    whh1 = u(keys[1], (4 * H, H))
    bih1 = u(keys[2], (4 * H,))
    bhh1 = u(keys[3], (4 * H,))
    wih2 = u(keys[4], (4 * H, H))
    whh2 = u(keys[5], (4 * H, H))
    bih2 = u(keys[6], (4 * H,))
    bhh2 = u(keys[7], (4 * H,))
    return {
        'wih1': wih1.T.astype(jnp.bfloat16),
        'whh1': whh1.T.astype(jnp.bfloat16),
        'b1': (bih1 + bhh1)[None, :],
        'wih2': wih2.T.astype(jnp.bfloat16),
        'whh2': whh2.T.astype(jnp.bfloat16),
        'b2': (bih2 + bhh2)[None, :],
    }


# -----------------------------------------------------------------------------
# Pure-JAX reference (same math as torch.nn.LSTM + softmax + bmm), all f32.
# -----------------------------------------------------------------------------
def reference_forward(x, params):
    B, T, D = x.shape
    H = params['whh1'].shape[0]
    wih1 = params['wih1'].astype(jnp.float32)
    whh1 = params['whh1'].astype(jnp.float32)
    wih2 = params['wih2'].astype(jnp.float32)
    whh2 = params['whh2'].astype(jnp.float32)
    b1 = params['b1']
    b2 = params['b2']

    def cell(inp, h, c, wih, whh, b):
        g = inp @ wih + h @ whh + b
        i = jax.nn.sigmoid(g[:, 0 * H:1 * H])
        f = jax.nn.sigmoid(g[:, 1 * H:2 * H])
        gg = jnp.tanh(g[:, 2 * H:3 * H])
        o = jax.nn.sigmoid(g[:, 3 * H:4 * H])
        c_new = f * c + i * gg
        h_new = o * jnp.tanh(c_new)
        return h_new, c_new

    h1 = jnp.zeros((B, H), jnp.float32)
    c1 = jnp.zeros((B, H), jnp.float32)
    h2 = jnp.zeros((B, H), jnp.float32)
    c2 = jnp.zeros((B, H), jnp.float32)
    outs = []
    for t in range(T):
        xt = x[:, t, :]
        h1, c1 = cell(xt, h1, c1, wih1, whh1, b1)
        h2, c2 = cell(h1, h2, c2, wih2, whh2, b2)
        outs.append(h2)
    z = jnp.stack(outs, axis=1)                          # (B, T, H)
    prob = jax.nn.softmax(z, axis=2)[:, :, 1:]           # (B, T, S)
    return jnp.einsum('bts,btd->bsd', prob, x)           # (B, S, D)


if __name__ == "__main__":
    batch, in_seq_len, in_dim = 2, 8, 32
    out_seq_len = 7                                       # hidden = out_seq_len + 1 = 8

    key = jax.random.PRNGKey(0)
    kx, kp = jax.random.split(key)
    x = jax.random.normal(kx, (batch, in_seq_len, in_dim), jnp.float32)
    params = init_params(kp, in_dim, out_seq_len)

    out = ctc_module_forward(x, params)
    out = jax.block_until_ready(out)

    ref = reference_forward(x, params)
    assert out.shape == (batch, out_seq_len, in_dim), out.shape
    np.testing.assert_allclose(np.asarray(out), np.asarray(ref), atol=1e-2, rtol=1e-2)

    print("KERNEL_OK")
</pallas_src>

<mosaic_0001>
module attributes {stable_mosaic.version = 11 : i64} {
  func.func @_ctc_fused_kernel(%arg0: memref<2x8x32xf32, #tpu.memory_space<vmem>>, %arg1: memref<32x32xbf16, #tpu.memory_space<vmem>>, %arg2: memref<8x32xbf16, #tpu.memory_space<vmem>>, %arg3: memref<1x32xf32, #tpu.memory_space<vmem>>, %arg4: memref<8x32xbf16, #tpu.memory_space<vmem>>, %arg5: memref<8x32xbf16, #tpu.memory_space<vmem>>, %arg6: memref<1x32xf32, #tpu.memory_space<vmem>>, %arg7: memref<2x7x32xf32, #tpu.memory_space<vmem>>) attributes {dimension_semantics = [], scalar_prefetch = 0 : i64, scratch_operands = 0 : i64, tpu.core_type = #tpu.core_type<tc>} {
    %c0 = arith.constant 0 : index
    %c0_0 = arith.constant 0 : index
    %c0_1 = arith.constant 0 : index
    %0 = vector.load %arg0[%c0, %c0_0, %c0_1] : memref<2x8x32xf32, #tpu.memory_space<vmem>>, vector<2x8x32xf32>
    %1 = tpu.transpose %0, [1, 0, 2] : vector<2x8x32xf32> -> vector<8x2x32xf32>
    %c0_2 = arith.constant 0 : index
    %c0_3 = arith.constant 0 : index
    %2 = vector.load %arg2[%c0_2, %c0_3] : memref<8x32xbf16, #tpu.memory_space<vmem>>, vector<8x32xbf16>
    %c0_4 = arith.constant 0 : index
    %c0_5 = arith.constant 0 : index
    %3 = vector.load %arg5[%c0_4, %c0_5] : memref<8x32xbf16, #tpu.memory_space<vmem>>, vector<8x32xbf16>
    %c0_6 = arith.constant 0 : index
    %c0_7 = arith.constant 0 : index
    %4 = vector.load %arg6[%c0_6, %c0_7] : memref<1x32xf32, #tpu.memory_space<vmem>>, vector<1x32xf32>
    %5 = vector.shape_cast %1 : vector<8x2x32xf32> to vector<16x32xf32>
    %6 = arith.truncf %5 : vector<16x32xf32> to vector<16x32xbf16>
    %c0_8 = arith.constant 0 : index
    %c0_9 = arith.constant 0 : index
    %7 = vector.load %arg1[%c0_8, %c0_9] : memref<32x32xbf16, #tpu.memory_space<vmem>>, vector<32x32xbf16>
    %cst = arith.constant dense<0.000000e+00> : vector<16x32xf32>
    %8 = tpu.matmul %6, %7, %cst {dimension_numbers = #tpu.dot_dimension_numbers<[1], [0], [0], [1], [0, 0, 1, 1], [], []>} : vector<16x32xbf16>, vector<32x32xbf16>, vector<16x32xf32> -> vector<16x32xf32>
    %c0_10 = arith.constant 0 : index
    %c0_11 = arith.constant 0 : index
    %9 = vector.load %arg3[%c0_10, %c0_11] : memref<1x32xf32, #tpu.memory_space<vmem>>, vector<1x32xf32>
    %10 = vector.broadcast %9 : vector<1x32xf32> to vector<16x32xf32>
    %11 = arith.addf %8, %10 : vector<16x32xf32>
    %12 = vector.shape_cast %11 : vector<16x32xf32> to vector<8x2x32xf32>
    %cst_12 = arith.constant 0.000000e+00 : f32
    %13 = vector.broadcast %cst_12 : f32 to vector<2x8xf32>
    %cst_13 = arith.constant 0.000000e+00 : f32
    %14 = vector.broadcast %cst_13 : f32 to vector<2x8xf32>
    %15 = vector.extract_strided_slice %12 {offsets = [0, 0, 0], sizes = [1, 2, 32], strides = [1, 1, 1]} : vector<8x2x32xf32> to vector<1x2x32xf32>
    %16 = vector.shape_cast %15 : vector<1x2x32xf32> to vector<2x32xf32>
    %17 = arith.truncf %13 : vector<2x8xf32> to vector<2x8xbf16>
    %cst_14 = arith.constant dense<0.000000e+00> : vector<2x32xf32>
    %18 = tpu.matmul %17, %2, %cst_14 {dimension_numbers = #tpu.dot_dimension_numbers<[1], [0], [0], [1], [0, 0, 1, 1], [], []>} : vector<2x8xbf16>, vector<8x32xbf16>, vector<2x32xf32> -> vector<2x32xf32>
    %19 = arith.addf %16, %18 : vector<2x32xf32>
    %20 = arith.negf %19 : vector<2x32xf32>
    %21 = math.exp %20 : vector<2x32xf32>
    %cst_15 = arith.constant 1.000000e+00 : f32
    %22 = vector.broadcast %cst_15 : f32 to vector<2x32xf32>
    %23 = arith.addf %22, %21 : vector<2x32xf32>
    %24 = arith.divf %22, %23 : vector<2x32xf32>
    %25 = math.tanh %19 : vector<2x32xf32>
    %26 = vector.extract_strided_slice %24 {offsets = [0, 0], sizes = [2, 8], strides = [1, 1]} : vector<2x32xf32> to vector<2x8xf32>
    %27 = vector.extract_strided_slice %24 {offsets = [0, 8], sizes = [2, 8], strides = [1, 1]} : vector<2x32xf32> to vector<2x8xf32>
    %28 = vector.extract_strided_slice %25 {offsets = [0, 16], sizes = [2, 8], strides = [1, 1]} : vector<2x32xf32> to vector<2x8xf32>
    %29 = vector.extract_strided_slice %24 {offsets = [0, 24], sizes = [2, 8], strides = [1, 1]} : vector<2x32xf32> to vector<2x8xf32>
    %30 = arith.mulf %27, %14 : vector<2x8xf32>
    %31 = arith.mulf %26, %28 : vector<2x8xf32>
    %32 = arith.addf %30, %31 : vector<2x8xf32>
    %33 = math.tanh %32 : vector<2x8xf32>
    %34 = arith.mulf %29, %33 : vector<2x8xf32>
    %35 = vector.extract_strided_slice %12 {offsets = [1, 0, 0], sizes = [1, 2, 32], strides = [1, 1, 1]} : vector<8x2x32xf32> to vector<1x2x32xf32>
    %36 = vector.shape_cast %35 : vector<1x2x32xf32> to vector<2x32xf32>
    %37 = arith.truncf %34 : vector<2x8xf32> to vector<2x8xbf16>
    %cst_16 = arith.constant dense<0.000000e+00> : vector<2x32xf32>
    %38 = tpu.matmul %37, %2, %cst_16 {dimension_numbers = #tpu.dot_dimension_numbers<[1], [0], [0], [1], [0, 0, 1, 1], [], []>} : vector<2x8xbf16>, vector<8x32xbf16>, vector<2x32xf32> -> vector<2x32xf32>
    %39 = arith.addf %36, %38 : vector<2x32xf32>
    %40 = arith.negf %39 : vector<2x32xf32>
    %41 = math.exp %40 : vector<2x32xf32>
    %cst_17 = arith.constant 1.000000e+00 : f32
    %42 = vector.broadcast %cst_17 : f32 to vector<2x32xf32>
    %43 = arith.addf %42, %41 : vector<2x32xf32>
    %44 = arith.divf %42, %43 : vector<2x32xf32>
    %45 = math.tanh %39 : vector<2x32xf32>
    %46 = vector.extract_strided_slice %44 {offsets = [0, 0], sizes = [2, 8], strides = [1, 1]} : vector<2x32xf32> to vector<2x8xf32>
    %47 = vector.extract_strided_slice %44 {offsets = [0, 8], sizes = [2, 8], strides = [1, 1]} : vector<2x32xf32> to vector<2x8xf32>
    %48 = vector.extract_strided_slice %45 {offsets = [0, 16], sizes = [2, 8], strides = [1, 1]} : vector<2x32xf32> to vector<2x8xf32>
    %49 = vector.extract_strided_slice %44 {offsets = [0, 24], sizes = [2, 8], strides = [1, 1]} : vector<2x32xf32> to vector<2x8xf32>
    %50 = arith.mulf %47, %32 : vector<2x8xf32>
    %51 = arith.mulf %46, %48 : vector<2x8xf32>
    %52 = arith.addf %50, %51 : vector<2x8xf32>
    %53 = math.tanh %52 : vector<2x8xf32>
    %54 = arith.mulf %49, %53 : vector<2x8xf32>
    %55 = vector.extract_strided_slice %12 {offsets = [2, 0, 0], sizes = [1, 2, 32], strides = [1, 1, 1]} : vector<8x2x32xf32> to vector<1x2x32xf32>
    %56 = vector.shape_cast %55 : vector<1x2x32xf32> to vector<2x32xf32>
    %57 = arith.truncf %54 : vector<2x8xf32> to vector<2x8xbf16>
    %cst_18 = arith.constant dense<0.000000e+00> : vector<2x32xf32>
    %58 = tpu.matmul %57, %2, %cst_18 {dimension_numbers = #tpu.dot_dimension_numbers<[1], [0], [0], [1], [0, 0, 1, 1], [], []>} : vector<2x8xbf16>, vector<8x32xbf16>, vector<2x32xf32> -> vector<2x32xf32>
    %59 = arith.addf %56, %58 : vector<2x32xf32>
    %60 = arith.negf %59 : vector<2x32xf32>
    %61 = math.exp %60 : vector<2x32xf32>
    %cst_19 = arith.constant 1.000000e+00 : f32
    %62 = vector.broadcast %cst_19 : f32 to vector<2x32xf32>
    %63 = arith.addf %62, %61 : vector<2x32xf32>
    %64 = arith.divf %62, %63 : vector<2x32xf32>
    %65 = math.tanh %59 : vector<2x32xf32>
    %66 = vector.extract_strided_slice %64 {offsets = [0, 0], sizes = [2, 8], strides = [1, 1]} : vector<2x32xf32> to vector<2x8xf32>
    %67 = vector.extract_strided_slice %64 {offsets = [0, 8], sizes = [2, 8], strides = [1, 1]} : vector<2x32xf32> to vector<2x8xf32>
    %68 = vector.extract_strided_slice %65 {offsets = [0, 16], sizes = [2, 8], strides = [1, 1]} : vector<2x32xf32> to vector<2x8xf32>
    %69 = vector.extract_strided_slice %64 {offsets = [0, 24], sizes = [2, 8], strides = [1, 1]} : vector<2x32xf32> to vector<2x8xf32>
    %70 = arith.mulf %67, %52 : vector<2x8xf32>
    %71 = arith.mulf %66, %68 : vector<2x8xf32>
    %72 = arith.addf %70, %71 : vector<2x8xf32>
    %73 = math.tanh %72 : vector<2x8xf32>
    %74 = arith.mulf %69, %73 : vector<2x8xf32>
    %75 = vector.extract_strided_slice %12 {offsets = [3, 0, 0], sizes = [1, 2, 32], strides = [1, 1, 1]} : vector<8x2x32xf32> to vector<1x2x32xf32>
    %76 = vector.shape_cast %75 : vector<1x2x32xf32> to vector<2x32xf32>
    %77 = arith.truncf %74 : vector<2x8xf32> to vector<2x8xbf16>
    %cst_20 = arith.constant dense<0.000000e+00> : vector<2x32xf32>
    %78 = tpu.matmul %77, %2, %cst_20 {dimension_numbers = #tpu.dot_dimension_numbers<[1], [0], [0], [1], [0, 0, 1, 1], [], []>} : vector<2x8xbf16>, vector<8x32xbf16>, vector<2x32xf32> -> vector<2x32xf32>
    %79 = arith.addf %76, %78 : vector<2x32xf32>
    %80 = arith.negf %79 : vector<2x32xf32>
    %81 = math.exp %80 : vector<2x32xf32>
    %cst_21 = arith.constant 1.000000e+00 : f32
    %82 = vector.broadcast %cst_21 : f32 to vector<2x32xf32>
    %83 = arith.addf %82, %81 : vector<2x32xf32>
    %84 = arith.divf %82, %83 : vector<2x32xf32>
    %85 = math.tanh %79 : vector<2x32xf32>
    %86 = vector.extract_strided_slice %84 {offsets = [0, 0], sizes = [2, 8], strides = [1, 1]} : vector<2x32xf32> to vector<2x8xf32>
    %87 = vector.extract_strided_slice %84 {offsets = [0, 8], sizes = [2, 8], strides = [1, 1]} : vector<2x32xf32> to vector<2x8xf32>
    %88 = vector.extract_strided_slice %85 {offsets = [0, 16], sizes = [2, 8], strides = [1, 1]} : vector<2x32xf32> to vector<2x8xf32>
    %89 = vector.extract_strided_slice %84 {offsets = [0, 24], sizes = [2, 8], strides = [1, 1]} : vector<2x32xf32> to vector<2x8xf32>
    %90 = arith.mulf %87, %72 : vector<2x8xf32>
    %91 = arith.mulf %86, %88 : vector<2x8xf32>
    %92 = arith.addf %90, %91 : vector<2x8xf32>
    %93 = math.tanh %92 : vector<2x8xf32>
    %94 = arith.mulf %89, %93 : vector<2x8xf32>
    %95 = vector.extract_strided_slice %12 {offsets = [4, 0, 0], sizes = [1, 2, 32], strides = [1, 1, 1]} : vector<8x2x32xf32> to vector<1x2x32xf32>
    %96 = vector.shape_cast %95 : vector<1x2x32xf32> to vector<2x32xf32>
    %97 = arith.truncf %94 : vector<2x8xf32> to vector<2x8xbf16>
    %cst_22 = arith.constant dense<0.000000e+00> : vector<2x32xf32>
    %98 = tpu.matmul %97, %2, %cst_22 {dimension_numbers = #tpu.dot_dimension_numbers<[1], [0], [0], [1], [0, 0, 1, 1], [], []>} : vector<2x8xbf16>, vector<8x32xbf16>, vector<2x32xf32> -> vector<2x32xf32>
    %99 = arith.addf %96, %98 : vector<2x32xf32>
    %100 = arith.negf %99 : vector<2x32xf32>
    %101 = math.exp %100 : vector<2x32xf32>
    %cst_23 = arith.constant 1.000000e+00 : f32
    %102 = vector.broadcast %cst_23 : f32 to vector<2x32xf32>
    %103 = arith.addf %102, %101 : vector<2x32xf32>
    %104 = arith.divf %102, %103 : vector<2x32xf32>
    %105 = math.tanh %99 : vector<2x32xf32>
    %106 = vector.extract_strided_slice %104 {offsets = [0, 0], sizes = [2, 8], strides = [1, 1]} : vector<2x32xf32> to vector<2x8xf32>
    %107 = vector.extract_strided_slice %104 {offsets = [0, 8], sizes = [2, 8], strides = [1, 1]} : vector<2x32xf32> to vector<2x8xf32>
    %108 = vector.extract_strided_slice %105 {offsets = [0, 16], sizes = [2, 8], strides = [1, 1]} : vector<2x32xf32> to vector<2x8xf32>
    %109 = vector.extract_strided_slice %104 {offsets = [0, 24], sizes = [2, 8], strides = [1, 1]} : vector<2x32xf32> to vector<2x8xf32>
    %110 = arith.mulf %107, %92 : vector<2x8xf32>
    %111 = arith.mulf %106, %108 : vector<2x8xf32>
    %112 = arith.addf %110, %111 : vector<2x8xf32>
    %113 = math.tanh %112 : vector<2x8xf32>
    %114 = arith.mulf %109, %113 : vector<2x8xf32>
    %115 = vector.extract_strided_slice %12 {offsets = [5, 0, 0], sizes = [1, 2, 32], strides = [1, 1, 1]} : vector<8x2x32xf32> to vector<1x2x32xf32>
    %116 = vector.shape_cast %115 : vector<1x2x32xf32> to vector<2x32xf32>
    %117 = arith.truncf %114 : vector<2x8xf32> to vector<2x8xbf16>
    %cst_24 = arith.constant dense<0.000000e+00> : vector<2x32xf32>
    %118 = tpu.matmul %117, %2, %cst_24 {dimension_numbers = #tpu.dot_dimension_numbers<[1], [0], [0], [1], [0, 0, 1, 1], [], []>} : vector<2x8xbf16>, vector<8x32xbf16>, vector<2x32xf32> -> vector<2x32xf32>
    %119 = arith.addf %116, %118 : vector<2x32xf32>
    %120 = arith.negf %119 : vector<2x32xf32>
    %121 = math.exp %120 : vector<2x32xf32>
    %cst_25 = arith.constant 1.000000e+00 : f32
    %122 = vector.broadcast %cst_25 : f32 to vector<2x32xf32>
    %123 = arith.addf %122, %121 : vector<2x32xf32>
    %124 = arith.divf %122, %123 : vector<2x32xf32>
    %125 = math.tanh %119 : vector<2x32xf32>
    %126 = vector.extract_strided_slice %124 {offsets = [0, 0], sizes = [2, 8], strides = [1, 1]} : vector<2x32xf32> to vector<2x8xf32>
    %127 = vector.extract_strided_slice %124 {offsets = [0, 8], sizes = [2, 8], strides = [1, 1]} : vector<2x32xf32> to vector<2x8xf32>
    %128 = vector.extract_strided_slice %125 {offsets = [0, 16], sizes = [2, 8], strides = [1, 1]} : vector<2x32xf32> to vector<2x8xf32>
    %129 = vector.extract_strided_slice %124 {offsets = [0, 24], sizes = [2, 8], strides = [1, 1]} : vector<2x32xf32> to vector<2x8xf32>
    %130 = arith.mulf %127, %112 : vector<2x8xf32>
    %131 = arith.mulf %126, %128 : vector<2x8xf32>
    %132 = arith.addf %130, %131 : vector<2x8xf32>
    %133 = math.tanh %132 : vector<2x8xf32>
    %134 = arith.mulf %129, %133 : vector<2x8xf32>
    %135 = vector.extract_strided_slice %12 {offsets = [6, 0, 0], sizes = [1, 2, 32], strides = [1, 1, 1]} : vector<8x2x32xf32> to vector<1x2x32xf32>
    %136 = vector.shape_cast %135 : vector<1x2x32xf32> to vector<2x32xf32>
    %137 = arith.truncf %134 : vector<2x8xf32> to vector<2x8xbf16>
    %cst_26 = arith.constant dense<0.000000e+00> : vector<2x32xf32>
    %138 = tpu.matmul %137, %2, %cst_26 {dimension_numbers = #tpu.dot_dimension_numbers<[1], [0], [0], [1], [0, 0, 1, 1], [], []>} : vector<2x8xbf16>, vector<8x32xbf16>, vector<2x32xf32> -> vector<2x32xf32>
    %139 = arith.addf %136, %138 : vector<2x32xf32>
    %140 = arith.negf %139 : vector<2x32xf32>
    %141 = math.exp %140 : vector<2x32xf32>
    %cst_27 = arith.constant 1.000000e+00 : f32
    %142 = vector.broadcast %cst_27 : f32 to vector<2x32xf32>
    %143 = arith.addf %142, %141 : vector<2x32xf32>
    %144 = arith.divf %142, %143 : vector<2x32xf32>
    %145 = math.tanh %139 : vector<2x32xf32>
    %146 = vector.extract_strided_slice %144 {offsets = [0, 0], sizes = [2, 8], strides = [1, 1]} : vector<2x32xf32> to vector<2x8xf32>
    %147 = vector.extract_strided_slice %144 {offsets = [0, 8], sizes = [2, 8], strides = [1, 1]} : vector<2x32xf32> to vector<2x8xf32>
    %148 = vector.extract_strided_slice %145 {offsets = [0, 16], sizes = [2, 8], strides = [1, 1]} : vector<2x32xf32> to vector<2x8xf32>
    %149 = vector.extract_strided_slice %144 {offsets = [0, 24], sizes = [2, 8], strides = [1, 1]} : vector<2x32xf32> to vector<2x8xf32>
    %150 = arith.mulf %147, %132 : vector<2x8xf32>
    %151 = arith.mulf %146, %148 : vector<2x8xf32>
    %152 = arith.addf %150, %151 : vector<2x8xf32>
    %153 = math.tanh %152 : vector<2x8xf32>
    %154 = arith.mulf %149, %153 : vector<2x8xf32>
    %155 = vector.extract_strided_slice %12 {offsets = [7, 0, 0], sizes = [1, 2, 32], strides = [1, 1, 1]} : vector<8x2x32xf32> to vector<1x2x32xf32>
    %156 = vector.shape_cast %155 : vector<1x2x32xf32> to vector<2x32xf32>
    %157 = arith.truncf %154 : vector<2x8xf32> to vector<2x8xbf16>
    %cst_28 = arith.constant dense<0.000000e+00> : vector<2x32xf32>
    %158 = tpu.matmul %157, %2, %cst_28 {dimension_numbers = #tpu.dot_dimension_numbers<[1], [0], [0], [1], [0, 0, 1, 1], [], []>} : vector<2x8xbf16>, vector<8x32xbf16>, vector<2x32xf32> -> vector<2x32xf32>
    %159 = arith.addf %156, %158 : vector<2x32xf32>
    %160 = arith.negf %159 : vector<2x32xf32>
    %161 = math.exp %160 : vector<2x32xf32>
    %cst_29 = arith.constant 1.000000e+00 : f32
    %162 = vector.broadcast %cst_29 : f32 to vector<2x32xf32>
    %163 = arith.addf %162, %161 : vector<2x32xf32>
    %164 = arith.divf %162, %163 : vector<2x32xf32>
    %165 = math.tanh %159 : vector<2x32xf32>
    %166 = vector.extract_strided_slice %164 {offsets = [0, 0], sizes = [2, 8], strides = [1, 1]} : vector<2x32xf32> to vector<2x8xf32>
    %167 = vector.extract_strided_slice %164 {offsets = [0, 8], sizes = [2, 8], strides = [1, 1]} : vector<2x32xf32> to vector<2x8xf32>
    %168 = vector.extract_strided_slice %165 {offsets = [0, 16], sizes = [2, 8], strides = [1, 1]} : vector<2x32xf32> to vector<2x8xf32>
    %169 = vector.extract_strided_slice %164 {offsets = [0, 24], sizes = [2, 8], strides = [1, 1]} : vector<2x32xf32> to vector<2x8xf32>
    %170 = arith.mulf %167, %152 : vector<2x8xf32>
    %171 = arith.mulf %166, %168 : vector<2x8xf32>
    %172 = arith.addf %170, %171 : vector<2x8xf32>
    %173 = math.tanh %172 : vector<2x8xf32>
    %174 = arith.mulf %169, %173 : vector<2x8xf32>
    %175 = vector.shape_cast %34 : vector<2x8xf32> to vector<1x2x8xf32>
    %176 = vector.shape_cast %54 : vector<2x8xf32> to vector<1x2x8xf32>
    %177 = vector.shape_cast %74 : vector<2x8xf32> to vector<1x2x8xf32>
    %178 = vector.shape_cast %94 : vector<2x8xf32> to vector<1x2x8xf32>
    %179 = vector.shape_cast %114 : vector<2x8xf32> to vector<1x2x8xf32>
    %180 = vector.shape_cast %134 : vector<2x8xf32> to vector<1x2x8xf32>
    %181 = vector.shape_cast %154 : vector<2x8xf32> to vector<1x2x8xf32>
    %182 = vector.shape_cast %174 : vector<2x8xf32> to vector<1x2x8xf32>
    %183 = tpu.concatenate %175, %176, %177, %178, %179, %180, %181, %182 in 0 : vector<1x2x8xf32>, vector<1x2x8xf32>, vector<1x2x8xf32>, vector<1x2x8xf32>, vector<1x2x8xf32>, vector<1x2x8xf32>, vector<1x2x8xf32>, vector<1x2x8xf32> -> vector<8x2x8xf32>
    %184 = vector.shape_cast %183 : vector<8x2x8xf32> to vector<16x8xf32>
    %185 = arith.truncf %184 : vector<16x8xf32> to vector<16x8xbf16>
    %c0_30 = arith.constant 0 : index
    %c0_31 = arith.constant 0 : index
    %186 = vector.load %arg4[%c0_30, %c0_31] : memref<8x32xbf16, #tpu.memory_space<vmem>>, vector<8x32xbf16>
    %cst_32 = arith.constant dense<0.000000e+00> : vector<16x32xf32>
    %187 = tpu.matmul %185, %186, %cst_32 {dimension_numbers = #tpu.dot_dimension_numbers<[1], [0], [0], [1], [0, 0, 1, 1], [], []>} : vector<16x8xbf16>, vector<8x32xbf16>, vector<16x32xf32> -> vector<16x32xf32>
    %188 = vector.broadcast %4 : vector<1x32xf32> to vector<16x32xf32>
    %189 = arith.addf %187, %188 : vector<16x32xf32>
    %190 = vector.shape_cast %189 : vector<16x32xf32> to vector<8x2x32xf32>
    %cst_33 = arith.constant 0.000000e+00 : f32
    %191 = vector.broadcast %cst_33 : f32 to vector<2x8xf32>
    %cst_34 = arith.constant 0.000000e+00 : f32
    %192 = vector.broadcast %cst_34 : f32 to vector<2x8xf32>
    %193 = vector.extract_strided_slice %190 {offsets = [0, 0, 0], sizes = [1, 2, 32], strides = [1, 1, 1]} : vector<8x2x32xf32> to vector<1x2x32xf32>
    %194 = vector.shape_cast %193 : vector<1x2x32xf32> to vector<2x32xf32>
    %195 = arith.truncf %191 : vector<2x8xf32> to vector<2x8xbf16>
    %cst_35 = arith.constant dense<0.000000e+00> : vector<2x32xf32>
    %196 = tpu.matmul %195, %3, %cst_35 {dimension_numbers = #tpu.dot_dimension_numbers<[1], [0], [0], [1], [0, 0, 1, 1], [], []>} : vector<2x8xbf16>, vector<8x32xbf16>, vector<2x32xf32> -> vector<2x32xf32>
    %197 = arith.addf %194, %196 : vector<2x32xf32>
    %198 = arith.negf %197 : vector<2x32xf32>
    %199 = math.exp %198 : vector<2x32xf32>
    %cst_36 = arith.constant 1.000000e+00 : f32
    %200 = vector.broadcast %cst_36 : f32 to vector<2x32xf32>
    %201 = arith.addf %200, %199 : vector<2x32xf32>
    %202 = arith.divf %200, %201 : vector<2x32xf32>
    %203 = math.tanh %197 : vector<2x32xf32>
    %204 = vector.extract_strided_slice %202 {offsets = [0, 0], sizes = [2, 8], strides = [1, 1]} : vector<2x32xf32> to vector<2x8xf32>
    %205 = vector.extract_strided_slice %202 {offsets = [0, 8], sizes = [2, 8], strides = [1, 1]} : vector<2x32xf32> to vector<2x8xf32>
    %206 = vector.extract_strided_slice %203 {offsets = [0, 16], sizes = [2, 8], strides = [1, 1]} : vector<2x32xf32> to vector<2x8xf32>
    %207 = vector.extract_strided_slice %202 {offsets = [0, 24], sizes = [2, 8], strides = [1, 1]} : vector<2x32xf32> to vector<2x8xf32>
    %208 = arith.mulf %205, %192 : vector<2x8xf32>
    %209 = arith.mulf %204, %206 : vector<2x8xf32>
    %210 = arith.addf %208, %209 : vector<2x8xf32>
    %211 = math.tanh %210 : vector<2x8xf32>
    %212 = arith.mulf %207, %211 : vector<2x8xf32>
    %213 = vector.extract_strided_slice %190 {offsets = [1, 0, 0], sizes = [1, 2, 32], strides = [1, 1, 1]} : vector<8x2x32xf32> to vector<1x2x32xf32>
    %214 = vector.shape_cast %213 : vector<1x2x32xf32> to vector<2x32xf32>
    %215 = arith.truncf %212 : vector<2x8xf32> to vector<2x8xbf16>
    %cst_37 = arith.constant dense<0.000000e+00> : vector<2x32xf32>
    %216 = tpu.matmul %215, %3, %cst_37 {dimension_numbers = #tpu.dot_dimension_numbers<[1], [0], [0], [1], [0, 0, 1, 1], [], []>} : vector<2x8xbf16>, vector<8x32xbf16>, vector<2x32xf32> -> vector<2x32xf32>
    %217 = arith.addf %214, %216 : vector<2x32xf32>
    %218 = arith.negf %217 : vector<2x32xf32>
    %219 = math.exp %218 : vector<2x32xf32>
    %cst_38 = arith.constant 1.000000e+00 : f32
    %220 = vector.broadcast %cst_38 : f32 to vector<2x32xf32>
    %221 = arith.addf %220, %219 : vector<2x32xf32>
    %222 = arith.divf %220, %221 : vector<2x32xf32>
    %223 = math.tanh %217 : vector<2x32xf32>
    %224 = vector.extract_strided_slice %222 {offsets = [0, 0], sizes = [2, 8], strides = [1, 1]} : vector<2x32xf32> to vector<2x8xf32>
    %225 = vector.extract_strided_slice %222 {offsets = [0, 8], sizes = [2, 8], strides = [1, 1]} : vector<2x32xf32> to vector<2x8xf32>
    %226 = vector.extract_strided_slice %223 {offsets = [0, 16], sizes = [2, 8], strides = [1, 1]} : vector<2x32xf32> to vector<2x8xf32>
    %227 = vector.extract_strided_slice %222 {offsets = [0, 24], sizes = [2, 8], strides = [1, 1]} : vector<2x32xf32> to vector<2x8xf32>
    %228 = arith.mulf %225, %210 : vector<2x8xf32>
    %229 = arith.mulf %224, %226 : vector<2x8xf32>
    %230 = arith.addf %228, %229 : vector<2x8xf32>
    %231 = math.tanh %230 : vector<2x8xf32>
    %232 = arith.mulf %227, %231 : vector<2x8xf32>
    %233 = vector.extract_strided_slice %190 {offsets = [2, 0, 0], sizes = [1, 2, 32], strides = [1, 1, 1]} : vector<8x2x32xf32> to vector<1x2x32xf32>
    %234 = vector.shape_cast %233 : vector<1x2x32xf32> to vector<2x32xf32>
    %235 = arith.truncf %232 : vector<2x8xf32> to vector<2x8xbf16>
    %cst_39 = arith.constant dense<0.000000e+00> : vector<2x32xf32>
    %236 = tpu.matmul %235, %3, %cst_39 {dimension_numbers = #tpu.dot_dimension_numbers<[1], [0], [0], [1], [0, 0, 1, 1], [], []>} : vector<2x8xbf16>, vector<8x32xbf16>, vector<2x32xf32> -> vector<2x32xf32>
    %237 = arith.addf %234, %236 : vector<2x32xf32>
    %238 = arith.negf %237 : vector<2x32xf32>
    %239 = math.exp %238 : vector<2x32xf32>
    %cst_40 = arith.constant 1.000000e+00 : f32
    %240 = vector.broadcast %cst_40 : f32 to vector<2x32xf32>
    %241 = arith.addf %240, %239 : vector<2x32xf32>
    %242 = arith.divf %240, %241 : vector<2x32xf32>
    %243 = math.tanh %237 : vector<2x32xf32>
    %244 = vector.extract_strided_slice %242 {offsets = [0, 0], sizes = [2, 8], strides = [1, 1]} : vector<2x32xf32> to vector<2x8xf32>
    %245 = vector.extract_strided_slice %242 {offsets = [0, 8], sizes = [2, 8], strides = [1, 1]} : vector<2x32xf32> to vector<2x8xf32>
    %246 = vector.extract_strided_slice %243 {offsets = [0, 16], sizes = [2, 8], strides = [1, 1]} : vector<2x32xf32> to vector<2x8xf32>
    %247 = vector.extract_strided_slice %242 {offsets = [0, 24], sizes = [2, 8], strides = [1, 1]} : vector<2x32xf32> to vector<2x8xf32>
    %248 = arith.mulf %245, %230 : vector<2x8xf32>
    %249 = arith.mulf %244, %246 : vector<2x8xf32>
    %250 = arith.addf %248, %249 : vector<2x8xf32>
    %251 = math.tanh %250 : vector<2x8xf32>
    %252 = arith.mulf %247, %251 : vector<2x8xf32>
    %253 = vector.extract_strided_slice %190 {offsets = [3, 0, 0], sizes = [1, 2, 32], strides = [1, 1, 1]} : vector<8x2x32xf32> to vector<1x2x32xf32>
    %254 = vector.shape_cast %253 : vector<1x2x32xf32> to vector<2x32xf32>
    %255 = arith.truncf %252 : vector<2x8xf32> to vector<2x8xbf16>
    %cst_41 = arith.constant dense<0.000000e+00> : vector<2x32xf32>
    %256 = tpu.matmul %255, %3, %cst_41 {dimension_numbers = #tpu.dot_dimension_numbers<[1], [0], [0], [1], [0, 0, 1, 1], [], []>} : vector<2x8xbf16>, vector<8x32xbf16>, vector<2x32xf32> -> vector<2x32xf32>
    %257 = arith.addf %254, %256 : vector<2x32xf32>
    %258 = arith.negf %257 : vector<2x32xf32>
    %259 = math.exp %258 : vector<2x32xf32>
    %cst_42 = arith.constant 1.000000e+00 : f32
    %260 = vector.broadcast %cst_42 : f32 to vector<2x32xf32>
    %261 = arith.addf %260, %259 : vector<2x32xf32>
    %262 = arith.divf %260, %261 : vector<2x32xf32>
    %263 = math.tanh %257 : vector<2x32xf32>
    %264 = vector.extract_strided_slice %262 {offsets = [0, 0], sizes = [2, 8], strides = [1, 1]} : vector<2x32xf32> to vector<2x8xf32>
    %265 = vector.extract_strided_slice %262 {offsets = [0, 8], sizes = [2, 8], strides = [1, 1]} : vector<2x32xf32> to vector<2x8xf32>
    %266 = vector.extract_strided_slice %263 {offsets = [0, 16], sizes = [2, 8], strides = [1, 1]} : vector<2x32xf32> to vector<2x8xf32>
    %267 = vector.extract_strided_slice %262 {offsets = [0, 24], sizes = [2, 8], strides = [1, 1]} : vector<2x32xf32> to vector<2x8xf32>
    %268 = arith.mulf %265, %250 : vector<2x8xf32>
    %269 = arith.mulf %264, %266 : vector<2x8xf32>
    %270 = arith.addf %268, %269 : vector<2x8xf32>
    %271 = math.tanh %270 : vector<2x8xf32>
    %272 = arith.mulf %267, %271 : vector<2x8xf32>
    %273 = vector.extract_strided_slice %190 {offsets = [4, 0, 0], sizes = [1, 2, 32], strides = [1, 1, 1]} : vector<8x2x32xf32> to vector<1x2x32xf32>
    %274 = vector.shape_cast %273 : vector<1x2x32xf32> to vector<2x32xf32>
    %275 = arith.truncf %272 : vector<2x8xf32> to vector<2x8xbf16>
    %cst_43 = arith.constant dense<0.000000e+00> : vector<2x32xf32>
    %276 = tpu.matmul %275, %3, %cst_43 {dimension_numbers = #tpu.dot_dimension_numbers<[1], [0], [0], [1], [0, 0, 1, 1], [], []>} : vector<2x8xbf16>, vector<8x32xbf16>, vector<2x32xf32> -> vector<2x32xf32>
    %277 = arith.addf %274, %276 : vector<2x32xf32>
    %278 = arith.negf %277 : vector<2x32xf32>
    %279 = math.exp %278 : vector<2x32xf32>
    %cst_44 = arith.constant 1.000000e+00 : f32
    %280 = vector.broadcast %cst_44 : f32 to vector<2x32xf32>
    %281 = arith.addf %280, %279 : vector<2x32xf32>
    %282 = arith.divf %280, %281 : vector<2x32xf32>
    %283 = math.tanh %277 : vector<2x32xf32>
    %284 = vector.extract_strided_slice %282 {offsets = [0, 0], sizes = [2, 8], strides = [1, 1]} : vector<2x32xf32> to vector<2x8xf32>
    %285 = vector.extract_strided_slice %282 {offsets = [0, 8], sizes = [2, 8], strides = [1, 1]} : vector<2x32xf32> to vector<2x8xf32>
    %286 = vector.extract_strided_slice %283 {offsets = [0, 16], sizes = [2, 8], strides = [1, 1]} : vector<2x32xf32> to vector<2x8xf32>
    %287 = vector.extract_strided_slice %282 {offsets = [0, 24], sizes = [2, 8], strides = [1, 1]} : vector<2x32xf32> to vector<2x8xf32>
    %288 = arith.mulf %285, %270 : vector<2x8xf32>
    %289 = arith.mulf %284, %286 : vector<2x8xf32>
    %290 = arith.addf %288, %289 : vector<2x8xf32>
    %291 = math.tanh %290 : vector<2x8xf32>
    %292 = arith.mulf %287, %291 : vector<2x8xf32>
    %293 = vector.extract_strided_slice %190 {offsets = [5, 0, 0], sizes = [1, 2, 32], strides = [1, 1, 1]} : vector<8x2x32xf32> to vector<1x2x32xf32>
    %294 = vector.shape_cast %293 : vector<1x2x32xf32> to vector<2x32xf32>
    %295 = arith.truncf %292 : vector<2x8xf32> to vector<2x8xbf16>
    %cst_45 = arith.constant dense<0.000000e+00> : vector<2x32xf32>
    %296 = tpu.matmul %295, %3, %cst_45 {dimension_numbers = #tpu.dot_dimension_numbers<[1], [0], [0], [1], [0, 0, 1, 1], [], []>} : vector<2x8xbf16>, vector<8x32xbf16>, vector<2x32xf32> -> vector<2x32xf32>
    %297 = arith.addf %294, %296 : vector<2x32xf32>
    %298 = arith.negf %297 : vector<2x32xf32>
    %299 = math.exp %298 : vector<2x32xf32>
    %cst_46 = arith.constant 1.000000e+00 : f32
    %300 = vector.broadcast %cst_46 : f32 to vector<2x32xf32>
    %301 = arith.addf %300, %299 : vector<2x32xf32>
    %302 = arith.divf %300, %301 : vector<2x32xf32>
    %303 = math.tanh %297 : vector<2x32xf32>
    %304 = vector.extract_strided_slice %302 {offsets = [0, 0], sizes = [2, 8], strides = [1, 1]} : vector<2x32xf32> to vector<2x8xf32>
    %305 = vector.extract_strided_slice %302 {offsets = [0, 8], sizes = [2, 8], strides = [1, 1]} : vector<2x32xf32> to vector<2x8xf32>
    %306 = vector.extract_strided_slice %303 {offsets = [0, 16], sizes = [2, 8], strides = [1, 1]} : vector<2x32xf32> to vector<2x8xf32>
    %307 = vector.extract_strided_slice %302 {offsets = [0, 24], sizes = [2, 8], strides = [1, 1]} : vector<2x32xf32> to vector<2x8xf32>
    %308 = arith.mulf %305, %290 : vector<2x8xf32>
    %309 = arith.mulf %304, %306 : vector<2x8xf32>
    %310 = arith.addf %308, %309 : vector<2x8xf32>
    %311 = math.tanh %310 : vector<2x8xf32>
    %312 = arith.mulf %307, %311 : vector<2x8xf32>
    %313 = vector.extract_strided_slice %190 {offsets = [6, 0, 0], sizes = [1, 2, 32], strides = [1, 1, 1]} : vector<8x2x32xf32> to vector<1x2x32xf32>
    %314 = vector.shape_cast %313 : vector<1x2x32xf32> to vector<2x32xf32>
    %315 = arith.truncf %312 : vector<2x8xf32> to vector<2x8xbf16>
    %cst_47 = arith.constant dense<0.000000e+00> : vector<2x32xf32>
    %316 = tpu.matmul %315, %3, %cst_47 {dimension_numbers = #tpu.dot_dimension_numbers<[1], [0], [0], [1], [0, 0, 1, 1], [], []>} : vector<2x8xbf16>, vector<8x32xbf16>, vector<2x32xf32> -> vector<2x32xf32>
    %317 = arith.addf %314, %316 : vector<2x32xf32>
    %318 = arith.negf %317 : vector<2x32xf32>
    %319 = math.exp %318 : vector<2x32xf32>
    %cst_48 = arith.constant 1.000000e+00 : f32
    %320 = vector.broadcast %cst_48 : f32 to vector<2x32xf32>
    %321 = arith.addf %320, %319 : vector<2x32xf32>
    %322 = arith.divf %320, %321 : vector<2x32xf32>
    %323 = math.tanh %317 : vector<2x32xf32>
    %324 = vector.extract_strided_slice %322 {offsets = [0, 0], sizes = [2, 8], strides = [1, 1]} : vector<2x32xf32> to vector<2x8xf32>
    %325 = vector.extract_strided_slice %322 {offsets = [0, 8], sizes = [2, 8], strides = [1, 1]} : vector<2x32xf32> to vector<2x8xf32>
    %326 = vector.extract_strided_slice %323 {offsets = [0, 16], sizes = [2, 8], strides = [1, 1]} : vector<2x32xf32> to vector<2x8xf32>
    %327 = vector.extract_strided_slice %322 {offsets = [0, 24], sizes = [2, 8], strides = [1, 1]} : vector<2x32xf32> to vector<2x8xf32>
    %328 = arith.mulf %325, %310 : vector<2x8xf32>
    %329 = arith.mulf %324, %326 : vector<2x8xf32>
    %330 = arith.addf %328, %329 : vector<2x8xf32>
    %331 = math.tanh %330 : vector<2x8xf32>
    %332 = arith.mulf %327, %331 : vector<2x8xf32>
    %333 = vector.extract_strided_slice %190 {offsets = [7, 0, 0], sizes = [1, 2, 32], strides = [1, 1, 1]} : vector<8x2x32xf32> to vector<1x2x32xf32>
    %334 = vector.shape_cast %333 : vector<1x2x32xf32> to vector<2x32xf32>
    %335 = arith.truncf %332 : vector<2x8xf32> to vector<2x8xbf16>
    %cst_49 = arith.constant dense<0.000000e+00> : vector<2x32xf32>
    %336 = tpu.matmul %335, %3, %cst_49 {dimension_numbers = #tpu.dot_dimension_numbers<[1], [0], [0], [1], [0, 0, 1, 1], [], []>} : vector<2x8xbf16>, vector<8x32xbf16>, vector<2x32xf32> -> vector<2x32xf32>
    %337 = arith.addf %334, %336 : vector<2x32xf32>
    %338 = arith.negf %337 : vector<2x32xf32>
    %339 = math.exp %338 : vector<2x32xf32>
    %cst_50 = arith.constant 1.000000e+00 : f32
    %340 = vector.broadcast %cst_50 : f32 to vector<2x32xf32>
    %341 = arith.addf %340, %339 : vector<2x32xf32>
    %342 = arith.divf %340, %341 : vector<2x32xf32>
    %343 = math.tanh %337 : vector<2x32xf32>
    %344 = vector.extract_strided_slice %342 {offsets = [0, 0], sizes = [2, 8], strides = [1, 1]} : vector<2x32xf32> to vector<2x8xf32>
    %345 = vector.extract_strided_slice %342 {offsets = [0, 8], sizes = [2, 8], strides = [1, 1]} : vector<2x32xf32> to vector<2x8xf32>
    %346 = vector.extract_strided_slice %343 {offsets = [0, 16], sizes = [2, 8], strides = [1, 1]} : vector<2x32xf32> to vector<2x8xf32>
    %347 = vector.extract_strided_slice %342 {offsets = [0, 24], sizes = [2, 8], strides = [1, 1]} : vector<2x32xf32> to vector<2x8xf32>
    %348 = arith.mulf %345, %330 : vector<2x8xf32>
    %349 = arith.mulf %344, %346 : vector<2x8xf32>
    %350 = arith.addf %348, %349 : vector<2x8xf32>
    %351 = math.tanh %350 : vector<2x8xf32>
    %352 = arith.mulf %347, %351 : vector<2x8xf32>
    %353 = vector.shape_cast %212 : vector<2x8xf32> to vector<2x1x8xf32>
    %354 = vector.shape_cast %232 : vector<2x8xf32> to vector<2x1x8xf32>
    %355 = vector.shape_cast %252 : vector<2x8xf32> to vector<2x1x8xf32>
    %356 = vector.shape_cast %272 : vector<2x8xf32> to vector<2x1x8xf32>
    %357 = vector.shape_cast %292 : vector<2x8xf32> to vector<2x1x8xf32>
    %358 = vector.shape_cast %312 : vector<2x8xf32> to vector<2x1x8xf32>
    %359 = vector.shape_cast %332 : vector<2x8xf32> to vector<2x1x8xf32>
    %360 = vector.shape_cast %352 : vector<2x8xf32> to vector<2x1x8xf32>
    %361 = tpu.concatenate %353, %354, %355, %356, %357, %358, %359, %360 in 1 : vector<2x1x8xf32>, vector<2x1x8xf32>, vector<2x1x8xf32>, vector<2x1x8xf32>, vector<2x1x8xf32>, vector<2x1x8xf32>, vector<2x1x8xf32>, vector<2x1x8xf32> -> vector<2x8x8xf32>
    %cst_51 = arith.constant dense<0xFF800000> : vector<2x8xf32>
    %362 = vector.multi_reduction <maximumf>, %361, %cst_51 [2] : vector<2x8x8xf32> to vector<2x8xf32>
    %363 = vector.shape_cast %362 : vector<2x8xf32> to vector<2x8x1xf32>
    %364 = vector.broadcast %363 : vector<2x8x1xf32> to vector<2x8x8xf32>
    %365 = arith.subf %361, %364 : vector<2x8x8xf32>
    %366 = math.exp %365 : vector<2x8x8xf32>
    %cst_52 = arith.constant dense<0.000000e+00> : vector<2x8xf32>
    %367 = vector.multi_reduction <add>, %366, %cst_52 [2] : vector<2x8x8xf32> to vector<2x8xf32>
    %368 = vector.shape_cast %367 : vector<2x8xf32> to vector<2x8x1xf32>
    %369 = tpu.reciprocal %368 {approx = true} : vector<2x8x1xf32> -> vector<2x8x1xf32>
    %370 = vector.broadcast %369 : vector<2x8x1xf32> to vector<2x8x8xf32>
    %371 = arith.mulf %366, %370 : vector<2x8x8xf32>
    %cst_53 = arith.constant dense<0.000000e+00> : vector<2x8x32xf32>
    %372 = tpu.matmul %371, %0, %cst_53 {dimension_numbers = #tpu.dot_dimension_numbers<[1], [1], [2], [2], [0, 0, 0, 2, 1, 2], [0], [0]>} : vector<2x8x8xf32>, vector<2x8x32xf32>, vector<2x8x32xf32> -> vector<2x8x32xf32>
    %373 = vector.extract_strided_slice %372 {offsets = [0, 1, 0], sizes = [2, 7, 32], strides = [1, 1, 1]} : vector<2x8x32xf32> to vector<2x7x32xf32>
    %c0_54 = arith.constant 0 : index
    %c0_55 = arith.constant 0 : index
    %c0_56 = arith.constant 0 : index
    %374 = vector.load %arg7[%c0_54, %c0_55, %c0_56] : memref<2x7x32xf32, #tpu.memory_space<vmem>>, vector<2x7x32xf32>
    tpu.vector_store %arg7[%c0_54, %c0_55, %c0_56], %373 {strides = array<i32>} : memref<2x7x32xf32, #tpu.memory_space<vmem>>, vector<2x7x32xf32>,
    return
  }
}

</mosaic_0001>

<bundles_post_ra>
// kernel: tpu_custom_call.1
= control target key start
LH: loop header
LB: loop body
LE: loop exit
PB: predicated region body
PF: predicated region fallthrough
CT: control target
= control target key end

     0   :  { %12 = vsyncpa [#allocation3], 0  ;;  %s2786_s0 = inlined_call_operand.hbm [shape: f32[2,8,32], index: 0, kind: input, shape index: {}]   ;;  %s2787_s1 = inlined_call_operand.hbm [shape: bf16[32,32], index: 1, kind: input, shape index: {}]   ;;  %s2788_s2 = inlined_call_operand.vmem [shape: bf16[8,32], index: 2, kind: input, shape index: {}]   ;;  %s2789_s3 = inlined_call_operand.vmem [shape: f32[1,32], index: 3, kind: input, shape index: {}]   ;;  %s2790_s4 = inlined_call_operand.vmem [shape: bf16[8,32], index: 4, kind: input, shape index: {}]   ;;  %s2791_s5 = inlined_call_operand.vmem [shape: bf16[8,32], index: 5, kind: input, shape index: {}]   ;;  %s2792_s6 = inlined_call_operand.vmem [shape: f32[1,32], index: 6, kind: input, shape index: {}]   ;;  %s2793_s7 = inlined_call_operand.vmem [shape: f32[2,7,32], index: 7, kind: output, shape index: {}]  }
   0x1   :  { %13 = vsyncpa [#allocation5], 0  ;;  %s2402_s24 = smov [#allocation2]   ;;  %s2354_s28 = scalar_lea.hbm %s2786_s0, 256 }
   0x2   :  { %s19_s25 = sshll.u32 %s2402_s24, 4  ;;  %p2355_p0 = scmp.ne.s32.totalorder %s2786_s0, %s2354_s28  ;;  %s20_s25 = int_to_ptr.vmem [resolvable:$true] %s19_s25 }
   0x3   :  { %p2358_p1 = scmp.lt.u32.totalorder %s2354_s28, %s2786_s0 }
   0x5   :  { %p2360_p2 = pnand %p2358_p1, %p2355_p0 }
   0x7   :  { %2363 = shalt.err (!%p2360_p2)
}
   0x8   :  { %s2364_s10 = scalar_lea.vmem %s20_s25, 256  ;;  %p2369_p4 = scmp.lt.s32.totalorder %s20_s25, %s20_s25 }
   0x9   :  { %p2365_p3 = scmp.ne.s32.totalorder %s20_s25, %s2364_s10  ;;  %p2370_p5 = scmp.lt.s32.totalorder %s2364_s10, %s2364_s10 }
   0xb   :  { %p2371_p6 = por %p2370_p5, %p2369_p4 }
   0xd   :  { %p2372_p7 = pnand %p2371_p6, %p2365_p3 }
   0xf   :  { %2375 = shalt.err (!%p2372_p7)
}
  0x10   :  { %s2403_s11 = smov 128   ;;  %s2404_s12 = smov 8  }
  0x11   :  { %25 = dma.hbm_to_vmem [thread:$0]  %s2786_s0, 256, %s20_s25, [#allocation3], %s2403_s11, %s2403_s11, %s2404_s12  }
  0x12   :  { %s2405_s15 = smov [#allocation4]   ;;  %s2376_s19 = scalar_lea.hbm %s2787_s1, 256 }
  0x13   :  { %s31_s16 = sshll.u32 %s2405_s15, 4  ;;  %p2377_p8 = scmp.ne.s32.totalorder %s2787_s1, %s2376_s19  ;;  %s32_s16 = int_to_ptr.vmem [resolvable:$true] %s31_s16 }
  0x14   :  { %p2380_p9 = scmp.lt.u32.totalorder %s2376_s19, %s2787_s1 }
  0x16   :  { %p2382_p10 = pnand %p2380_p9, %p2377_p8 }
  0x18   :  { %2385 = shalt.err (!%p2382_p10)
}
  0x19   :  { %s2386_s24 = scalar_lea.vmem %s32_s16, 256  ;;  %p2391_p12 = scmp.lt.s32.totalorder %s32_s16, %s32_s16 }
  0x1a   :  { %p2387_p11 = scmp.ne.s32.totalorder %s32_s16, %s2386_s24  ;;  %p2392_p13 = scmp.lt.s32.totalorder %s2386_s24, %s2386_s24 }
  0x1c   :  { %p2393_p0 = por %p2392_p13, %p2391_p12 }
  0x1e   :  { %p2394_p1 = pnand %p2393_p0, %p2387_p11 }
  0x20   :  { %2397 = shalt.err (!%p2394_p1)
}
  0x21   :  { %s2406_s0 = smov 64   ;;  %s2407_s25 = smov 4  }
  0x22   :  { %37 = dma.hbm_to_vmem [thread:$0]  %s2787_s1, 256, %s32_s16, [#allocation5], %s2406_s0, %s2406_s0, %s2407_s25  }
  0x23   :  { %2398 = dma.done.wait [#allocation3], 256  }
  0x24   :  { %2399 = vsyncadd [#allocation3], 4294967040 }
  0x25   :  { %2400 = dma.done.wait [#allocation5], 256  }
  0x26   :  { %2401 = vsyncadd [#allocation5], 4294967040  ;;  %v61_v0 = vlaneseq  ;;  %v2408_v1 = vmov 0.0   ;;  %vm2409_vm0 = vmmov 0   ;;  %v2410_v2 = vmov 1983009808  }
  0x27   :  { %2079 = vmatprep.subr.bf16.mxu0 %v2408_v1  ;;  %2087 = vmatprep.subr.bf16.mxu1 %v2408_v1  ;;  %v59_v3 = vunpack.c.l.s4 %v2410_v2  ;;  %v2411_v5 = vmov 1934713408   ;;  %v2214_v9 = vld [vmem:[#allocation4] sm:$0xff]   ;;  %vm287_vm1 = vcmask 1043456   ;;  %v2215_v11 = vld [vmem:[#allocation4 + $0x8] sm:$0xff]   ;;  %v55_v13 = vld [vmem:[#allocation2] sm:$0xff] }
  0x28   :  { %2083 = vmatprep.mubr.msk.bf16.mxu0 %vm2409_vm0, %v2408_v1  ;;  %v2486_v4 = vshrl.u32 %v61_v0, 7  ;;  %2089 = vmatprep.mubr.msk.bf16.mxu1 %vm2409_vm0, %v2408_v1  ;;  %v90_v6 = vunpack.c.l.s4 %v2411_v5  ;;  %v123_v12 = vld [vmem:[%s2788_s2] sm:$0xf]  ;;  %v56_v14 = vld [vmem:[#allocation2 + $0x8] sm:$0xff]  ;;  %v57_v16 = vcombine.high %v55_v13, %v2408_v1  ;;  %v2412_v27 = vmov 0   ;;  %s2413_s30 = smov 112  }
  0x29   :  { %v60_v7 = vunpack.c.0.s8 %v59_v3  ;;  %2080 = vmatpush3.bf16.msra.mxu0 %v2214_v9  ;;  %v2498_v15 = vsel %vm287_vm1, %v123_v12, 0  ;;  %v72_v18 = vcombine.high %v56_v14, %v2408_v1  ;;  %vm194_vm2 = vcmask 261120   ;;  %v2000_v51 = vld [vmem:[%s2789_s3] ss:$0 sm:$0xff]  ;;  %s2414_s3 = smov 16   ;;  %s2415_s8 = smov 104  }
  0x2a   :  { %v91_v10 = vunpack.c.0.s8 %v90_v6  ;;  %2081 = vmatprep.subr.bf16.mxu0 %v2408_v1  ;;  %2088 = vmatpush3.bf16.msra.mxu1 %v2498_v15  ;;  %vm283_vm3 = vcmask 64512   ;;  %vm1722_vm4 = vcmask 1040384   ;;  %vm1725_vm5 = vcmask 1041408  }
  0x2b   :  { %v2491_v8 = vsub.s32 %v60_v7, %v2486_v4  ;;  %2093 = vmatprep.subr.bf16.mxu1 %v2408_v1  ;;  %vm1728_vm6 = vcmask 1042432   ;;  %vm1733_vm7 = vcmask 1044480   ;;  %vm1736_vm8 = vcmask 1045504  }
  0x2c   :  { %v94_v20 = vsub.s32 %v91_v10, %v2486_v4  ;;  %vm1739_vm9 = vcmask 1046528   ;;  %vm1742_vm10 = vcmask 261312   ;;  %vm1991_vm11 = vcmask 261121  }
  0x2d   :  { %v64_v17 = vrot.slane %v55_v13, %v2491_v8  ;;  %v79_v19 = vrot.slane %v56_v14, %v2491_v8  ;;  %v71_v21 = vrot.slane %v57_v16, %v2491_v8  ;;  %v86_v22 = vrot.slane %v72_v18, %v2491_v8  ;;  %2082 = vmatpush3.bf16.msra.mxu0 %v2215_v11 }
  0x2e   :  { %2090 = vmatmul.mubr.bf16.vlgmr.msra.gmra.mrb[0].mxu1 %v2412_v27  ;;  %2099 = vmatprep.subr.bf16.mxu0 %v2408_v1 }
  0x2f   :  { %v87_v23 = vcombine.low %v64_v17, %v79_v19  ;;  %v88_v24 = vcombine.high %v64_v17, %v79_v19  ;;  %v103_v25 = vcombine.low %v71_v21, %v86_v22  ;;  %v104_v26 = vcombine.high %v71_v21, %v86_v22  ;;  %2094 = vmatpush3.bf16.msra.mxu1 %v2498_v15 }
  0x30   :  { %2095 = vmatprep.mubr.msk.bf16.mxu1 %vm2409_vm0, %v2408_v1  ;;  %2105 = vmatprep.subr.bf16.mxu1 %v2408_v1 }
  0x31   :  { %v95_v28 = vrot.slane %v87_v23, %v94_v20  ;;  %v102_v29 = vrot.slane %v88_v24, %v94_v20  ;;  %v111_v30 = vrot.slane %v103_v25, %v94_v20  ;;  %v118_v31 = vrot.slane %v104_v26, %v94_v20 }
  0x33   :  { %v119_v32 = vcombine.high %v95_v28, %v2408_v1  ;;  %v120_v33 = vcombine.high %v102_v29, %v2408_v1  ;;  %v121_v34 = vcombine.high %v111_v30, %v2408_v1  ;;  %v122_v35 = vcombine.high %v118_v31, %v2408_v1 }
  0x35   :  { %v134_v36 = vcombine.low %v95_v28, %v119_v32  ;;  %v135_v37 = vcombine.low %v102_v29, %v120_v33  ;;  %v151_v38 = vcombine.low %v111_v30, %v121_v34  ;;  %v152_v39 = vcombine.low %v118_v31, %v122_v35 }
  0x37   :  { %v142_v40 = vrot.slane %v134_v36, %v2491_v8  ;;  %v149_v41 = vrot.slane %v135_v37, %v2491_v8  ;;  %v159_v42 = vrot.slane %v151_v38, %v2491_v8  ;;  %v166_v43 = vrot.slane %v152_v39, %v2491_v8 }
  0x39   :  { %v150_v44 = vcombine.low %v142_v40, %v149_v41  ;;  %v167_v45 = vcombine.low %v159_v42, %v166_v43 }
  0x3b   :  { %v170_v46 = vpack.c.bf16 %v167_v45, %v150_v44 }
  0x3d   :  { %2084 = vmatmul.mubr.msk.bf16.vlgmr.msra.gmra.mrb[0].mxu0 %vm194_vm2, %v170_v46 }
  0x3e   :  { %2100 = vmatpush3.bf16.msra.mxu0 %v2498_v15  ;;  %2101 = vmatprep.mubr.msk.bf16.mxu0 %vm2409_vm0, %v2408_v1 }
  0x3f   :  { %2111 = vmatprep.subr.bf16.mxu0 %v2408_v1 }
 0x101   :  { %v325_v47 = vpop.f32.mrb[0].mxu1 }
 0x102   :  { %v2091_v48 = vpop.f32.mrb[1].mxu1 }
 0x103   :  { %v328_v49 = vpop.f32.mrb[2].mxu1 }
 0x104   :  { %v2092_v50 = vpop.f32.mrb[3].mxu1 }
 0x110   :  { %v232_v52 = vpop.f32.mrb[0].mxu0 }
 0x111   :  { %v2530_v53 = vadd.f32 %v2000_v51, %v232_v52  ;;  %v2085_v54 = vpop.f32.mrb[1].mxu0 }
 0x112   :  { %v235_v55 = vpop.f32.mrb[2].mxu0 }
 0x113   :  { %v248_v56 = vrot.slane %v2530_v53, %v2491_v8  ;;  %v2534_v57 = vadd.f32 %v2000_v51, %v235_v55  ;;  %v2086_v58 = vpop.f32.mrb[3].mxu0  ;;  %v241_v37 = vcombine.high %v2530_v53, %v2530_v53 }
 0x115   :  { %v331_v59 = vadd.f32 %v325_v47, %v248_v56  ;;  %v256_v14 = vcombine.high %v248_v56, %v248_v56  ;;  %v255_v38 = vrot.slane %v241_v37, %v2491_v8 }
 0x117   :  { %2216 = vtanh.f32 %v331_v59  ;;  %v2004_v61 = vmul.f32 -1.442695, %v331_v59 }
 0x119   :  { %2218 = vpow2.f32 %v2004_v61 }
 0x121   :  { %v2217_v60 = vpop.eup %2216 }
 0x122   :  { %341 = vrot.lane.b32.xlu0 %v2217_v60, %s2413_s30  ;;  %v257_v60 = vcombine.high %v255_v38, %v255_v38 }
 0x123   :  { %v2219_v62 = vpop.eup %2218 }
 0x124   :  { %v335_v63 = vadd.f32 1.0, %v2219_v62 }
 0x126   :  { %2220 = vrcp.f32 %v335_v63 }
 0x130   :  { %v2221_v0 = vpop.eup %2220 }
 0x131   :  { %v339_v5 = vmul.f32 0.0, %v2221_v0 }
 0x194   :  { %v342_v2 = vpop.permute.xlu0 %341 }
 0x195   :  { %v344_v3 = vmul.f32 %v2221_v0, %v342_v2 }
 0x197   :  { %346 = vrot.lane.b32.xlu0 %v344_v3, %s2404_s12 }
 0x209   :  { %v347_v6 = vpop.permute.xlu0 %346 }
 0x20a   :  { %v349_v7 = vadd.f32 %v347_v6, %v339_v5 }
 0x20c   :  { %2222 = vtanh.f32 %v349_v7 }
 0x216   :  { %v2223_v9 = vpop.eup %2222 }
 0x217   :  { %352 = vrot.lane.b32.xlu1 %v2223_v9, %s2414_s3 }
 0x289   :  { %v353_v10 = vpop.permute.xlu1 %352 }
 0x28a   :  { %v2539_v11 = vmul.f32 %v2221_v0, %v353_v10 }
 0x28c   :  { %v356_v12 = vpack.c.bf16 %v2539_v11, %v2539_v11 }
 0x28e   :  { %358 = vrot.lane.b32.xlu1 %v356_v12, %s2415_s8 }
 0x300   :  { %v359_v13 = vpop.permute.xlu1 %358 }
 0x301   :  { %2096 = vmatmul.mubr.msk.bf16.vlgmr.msra.gmra.mrb[4].mxu1 %vm283_vm3, %v359_v13 }
 0x302   :  { %2106 = vmatpush3.bf16.msra.mxu1 %v2498_v15  ;;  %2107 = vmatprep.mubr.msk.bf16.mxu1 %vm2409_vm0, %v2408_v1 }
 0x303   :  { %2117 = vmatprep.subr.bf16.mxu1 %v2408_v1 }
 0x3d4   :  { %v397_v16 = vpop.f32.mrb[4].mxu1 }
 0x3d5   :  { %v403_v17 = vadd.f32 %v397_v16, %v256_v14  ;;  %v2097_v18 = vpop.f32.mrb[5].mxu1 }
 0x3d6   :  { %v400_v19 = vpop.f32.mrb[6].mxu1 }
 0x3d7   :  { %2224 = vtanh.f32 %v403_v17  ;;  %v2098_v20 = vpop.f32.mrb[7].mxu1  ;;  %v2006_v22 = vmul.f32 -1.442695, %v403_v17 }
 0x3d9   :  { %2226 = vpow2.f32 %v2006_v22 }
 0x3e1   :  { %v2225_v21 = vpop.eup %2224 }
 0x3e2   :  { %413 = vrot.lane.b32.xlu0 %v2225_v21, %s2413_s30 }
 0x3e3   :  { %v2227_v23 = vpop.eup %2226 }
 0x3e4   :  { %v407_v24 = vadd.f32 1.0, %v2227_v23 }
 0x3e6   :  { %2228 = vrcp.f32 %v407_v24 }
 0x3f0   :  { %v2229_v25 = vpop.eup %2228 }
 0x3f1   :  { %v411_v29 = vmul.f32 %v2229_v25, %v349_v7 }
 0x454   :  { %v414_v26 = vpop.permute.xlu0 %413 }
 0x455   :  { %v416_v28 = vmul.f32 %v2229_v25, %v414_v26 }
 0x457   :  { %418 = vrot.lane.b32.xlu1 %v416_v28, %s2404_s12 }
 0x4c9   :  { %v419_v30 = vpop.permute.xlu1 %418 }
 0x4ca   :  { %v421_v31 = vadd.f32 %v419_v30, %v411_v29 }
 0x4cc   :  { %2230 = vtanh.f32 %v421_v31 }
 0x4d6   :  { %v2231_v32 = vpop.eup %2230 }
 0x4d7   :  { %424 = vrot.lane.b32.xlu0 %v2231_v32, %s2414_s3 }
 0x549   :  { %v425_v33 = vpop.permute.xlu0 %424 }
 0x54a   :  { %v2552_v34 = vmul.f32 %v2229_v25, %v425_v33 }
 0x54c   :  { %v428_v35 = vpack.c.bf16 %v2552_v34, %v2552_v34  ;;  %v868_v19 = vcombine.low %v2539_v11, %v2552_v34  ;;  %v265_v11 = vrot.slane %v2534_v57, %v2491_v8 }
 0x54e   :  { %430 = vrot.lane.b32.xlu1 %v428_v35, %s2415_s8  ;;  %v2580_v23 = vrot.slane %v868_v19, %v2491_v8 }
 0x5c0   :  { %v431_v36 = vpop.permute.xlu1 %430 }
 0x5c1   :  { %2102 = vmatmul.mubr.msk.bf16.vlgmr.msra.gmra.mrb[4].mxu0 %vm283_vm3, %v431_v36 }
 0x5c2   :  { %2112 = vmatpush3.bf16.msra.mxu0 %v2498_v15  ;;  %2113 = vmatprep.mubr.msk.bf16.mxu0 %vm2409_vm0, %v2408_v1 }
 0x5c3   :  { %2123 = vmatprep.subr.bf16.mxu0 %v2408_v1 }
 0x694   :  { %v469_v39 = vpop.f32.mrb[4].mxu0 }
 0x695   :  { %v475_v40 = vadd.f32 %v469_v39, %v255_v38  ;;  %v2103_v41 = vpop.f32.mrb[5].mxu0 }
 0x696   :  { %v472_v42 = vpop.f32.mrb[6].mxu0 }
 0x697   :  { %2232 = vtanh.f32 %v475_v40  ;;  %v2104_v43 = vpop.f32.mrb[7].mxu0  ;;  %v2008_v45 = vmul.f32 -1.442695, %v475_v40 }
 0x699   :  { %2234 = vpow2.f32 %v2008_v45 }
 0x6a1   :  { %v2233_v44 = vpop.eup %2232 }
 0x6a2   :  { %485 = vrot.lane.b32.xlu0 %v2233_v44, %s2413_s30 }
 0x6a3   :  { %v2235_v46 = vpop.eup %2234 }
 0x6a4   :  { %v479_v47 = vadd.f32 1.0, %v2235_v46 }
 0x6a6   :  { %2236 = vrcp.f32 %v479_v47 }
 0x6b0   :  { %v2237_v48 = vpop.eup %2236 }
 0x6b1   :  { %v483_v51 = vmul.f32 %v2237_v48, %v421_v31 }
 0x714   :  { %v486_v49 = vpop.permute.xlu0 %485 }
 0x715   :  { %v488_v50 = vmul.f32 %v2237_v48, %v486_v49 }
 0x717   :  { %490 = vrot.lane.b32.xlu1 %v488_v50, %s2404_s12 }
 0x789   :  { %v491_v52 = vpop.permute.xlu1 %490 }
 0x78a   :  { %v493_v53 = vadd.f32 %v491_v52, %v483_v51 }
 0x78c   :  { %2238 = vtanh.f32 %v493_v53 }
 0x796   :  { %v2239_v54 = vpop.eup %2238 }
 0x797   :  { %496 = vrot.lane.b32.xlu0 %v2239_v54, %s2414_s3 }
 0x809   :  { %v497_v55 = vpop.permute.xlu0 %496 }
 0x80a   :  { %v499_v56 = vmul.f32 %v2237_v48, %v497_v55  ;;  %v273_v48 = vcombine.high %v265_v11, %v265_v11 }
 0x80c   :  { %v500_v58 = vpack.c.bf16 %v499_v56, %v499_v56 }
 0x80e   :  { %502 = vrot.lane.b32.xlu1 %v500_v58, %s2415_s8 }
 0x880   :  { %v503_v59 = vpop.permute.xlu1 %502 }
 0x881   :  { %2108 = vmatmul.mubr.msk.bf16.vlgmr.msra.gmra.mrb[8].mxu1 %vm283_vm3, %v503_v59 }
 0x882   :  { %2118 = vmatpush3.bf16.msra.mxu1 %v2498_v15  ;;  %2119 = vmatprep.mubr.msk.bf16.mxu1 %vm2409_vm0, %v2408_v1 }
 0x883   :  { %2129 = vmatprep.subr.bf16.mxu1 %v2408_v1 }
 0x954   :  { %v541_v61 = vpop.f32.mrb[8].mxu1 }
 0x955   :  { %v547_v62 = vadd.f32 %v541_v61, %v257_v60  ;;  %v2109_v63 = vpop.f32.mrb[9].mxu1 }
 0x956   :  { %v544_v0 = vpop.f32.mrb[10].mxu1 }
 0x957   :  { %2240 = vtanh.f32 %v547_v62  ;;  %v2110_v2 = vpop.f32.mrb[11].mxu1  ;;  %v2010_v5 = vmul.f32 -1.442695, %v547_v62 }
 0x959   :  { %2242 = vpow2.f32 %v2010_v5 }
 0x961   :  { %v2241_v3 = vpop.eup %2240 }
 0x962   :  { %557 = vrot.lane.b32.xlu0 %v2241_v3, %s2413_s30 }
 0x963   :  { %v2243_v6 = vpop.eup %2242 }
 0x964   :  { %v551_v7 = vadd.f32 1.0, %v2243_v6 }
 0x966   :  { %2244 = vrcp.f32 %v551_v7  ;;  %v258_v7 = vcombine.high %v2534_v57, %v2534_v57 }
 0x970   :  { %v2245_v9 = vpop.eup %2244 }
 0x971   :  { %v555_v13 = vmul.f32 %v2245_v9, %v493_v53 }
 0x9d4   :  { %v558_v10 = vpop.permute.xlu0 %557 }
 0x9d5   :  { %v560_v12 = vmul.f32 %v2245_v9, %v558_v10 }
 0x9d7   :  { %562 = vrot.lane.b32.xlu1 %v560_v12, %s2404_s12 }
 0xa49   :  { %v563_v14 = vpop.permute.xlu1 %562 }
 0xa4a   :  { %v565_v16 = vadd.f32 %v563_v14, %v555_v13 }
 0xa4c   :  { %2246 = vtanh.f32 %v565_v16 }
 0xa56   :  { %v2247_v17 = vpop.eup %2246 }
 0xa57   :  { %568 = vrot.lane.b32.xlu0 %v2247_v17, %s2414_s3 }
 0xac9   :  { %v569_v18 = vpop.permute.xlu0 %568 }
 0xaca   :  { %v571_v20 = vmul.f32 %v2245_v9, %v569_v18  ;;  %v272_v9 = vrot.slane %v258_v7, %v2491_v8 }
 0xacc   :  { %v572_v21 = vpack.c.bf16 %v571_v20, %v571_v20  ;;  %v869_v22 = vcombine.low %v499_v56, %v571_v20 }
 0xace   :  { %v2583_v24 = vrot.slane %v869_v22, %v2491_v8  ;;  %574 = vrot.lane.b32.xlu1 %v572_v21, %s2415_s8 }
 0xad0   :  { %v884_v25 = vcombine.low %v2580_v23, %v2583_v24  ;;  %v2019_v23 = vld [vmem:[%s2792_s6] ss:$0 sm:$0xff] }
 0xb40   :  { %v575_v26 = vpop.permute.xlu1 %574 }
 0xb41   :  { %2114 = vmatmul.mubr.msk.bf16.vlgmr.msra.gmra.mrb[8].mxu0 %vm283_vm3, %v575_v26 }
 0xb42   :  { %2124 = vmatpush3.bf16.msra.mxu0 %v2498_v15  ;;  %2125 = vmatprep.mubr.msk.bf16.mxu0 %vm2409_vm0, %v2408_v1 }
 0xb43   :  { %2135 = vmatprep.subr.bf16.mxu0 %v2408_v1 }
 0xc14   :  { %v613_v28 = vpop.f32.mrb[8].mxu0 }
 0xc15   :  { %v619_v29 = vadd.f32 %v613_v28, %v265_v11  ;;  %v2115_v30 = vpop.f32.mrb[9].mxu0 }
 0xc16   :  { %v616_v31 = vpop.f32.mrb[10].mxu0 }
 0xc17   :  { %2248 = vtanh.f32 %v619_v29  ;;  %v2116_v32 = vpop.f32.mrb[11].mxu0  ;;  %v2012_v34 = vmul.f32 -1.442695, %v619_v29 }
 0xc19   :  { %2250 = vpow2.f32 %v2012_v34  ;;  %v274_v34 = vcombine.high %v272_v9, %v272_v9 }
 0xc21   :  { %v2249_v33 = vpop.eup %2248 }
 0xc22   :  { %629 = vrot.lane.b32.xlu0 %v2249_v33, %s2413_s30 }
 0xc23   :  { %v2251_v35 = vpop.eup %2250 }
 0xc24   :  { %v623_v36 = vadd.f32 1.0, %v2251_v35 }
 0xc26   :  { %2252 = vrcp.f32 %v623_v36 }
 0xc30   :  { %v2253_v37 = vpop.eup %2252 }
 0xc31   :  { %v627_v40 = vmul.f32 %v2253_v37, %v565_v16 }
 0xc94   :  { %v630_v38 = vpop.permute.xlu0 %629 }
 0xc95   :  { %v632_v39 = vmul.f32 %v2253_v37, %v630_v38 }
 0xc97   :  { %634 = vrot.lane.b32.xlu1 %v632_v39, %s2404_s12 }
 0xd09   :  { %v635_v41 = vpop.permute.xlu1 %634 }
 0xd0a   :  { %v637_v42 = vadd.f32 %v635_v41, %v627_v40 }
 0xd0c   :  { %2254 = vtanh.f32 %v637_v42 }
 0xd16   :  { %v2255_v43 = vpop.eup %2254 }
 0xd17   :  { %640 = vrot.lane.b32.xlu0 %v2255_v43, %s2414_s3 }
 0xd89   :  { %v641_v44 = vpop.permute.xlu0 %640 }
 0xd8a   :  { %v2598_v45 = vmul.f32 %v2253_v37, %v641_v44 }
 0xd8c   :  { %v644_v46 = vpack.c.bf16 %v2598_v45, %v2598_v45 }
 0xd8e   :  { %646 = vrot.lane.b32.xlu1 %v644_v46, %s2415_s8 }
 0xe00   :  { %v647_v47 = vpop.permute.xlu1 %646 }
 0xe01   :  { %2120 = vmatmul.mubr.msk.bf16.vlgmr.msra.gmra.mrb[12].mxu1 %vm283_vm3, %v647_v47 }
 0xe02   :  { %2130 = vmatpush3.bf16.msra.mxu1 %v2498_v15  ;;  %2131 = vmatprep.mubr.msk.bf16.mxu1 %vm2409_vm0, %v2408_v1 }
 0xe03   :  { %2141 = vmatprep.subr.bf16.mxu1 %v2408_v1 }
 0xed4   :  { %v685_v49 = vpop.f32.mrb[12].mxu1 }
 0xed5   :  { %v691_v50 = vadd.f32 %v685_v49, %v273_v48  ;;  %v2121_v51 = vpop.f32.mrb[13].mxu1 }
 0xed6   :  { %v688_v52 = vpop.f32.mrb[14].mxu1  ;;  %v905_v51 = vld [vmem:[%s2790_s4] sm:$0xf] }
 0xed7   :  { %2256 = vtanh.f32 %v691_v50  ;;  %v2122_v53 = vpop.f32.mrb[15].mxu1  ;;  %v2014_v55 = vmul.f32 -1.442695, %v691_v50  ;;  %v124_v52 = vld [vmem:[%s2791_s5] sm:$0xf] }
 0xed8   :  { %v919_v53 = vsel %vm287_vm1, %v905_v51, 0 }
 0xed9   :  { %2258 = vpow2.f32 %v2014_v55 }
 0xee1   :  { %v2257_v54 = vpop.eup %2256 }
 0xee2   :  { %701 = vrot.lane.b32.xlu0 %v2257_v54, %s2413_s30  ;;  %v2639_v54 = vsel %vm287_vm1, %v124_v52, 0 }
 0xee3   :  { %v2259_v56 = vpop.eup %2258 }
 0xee4   :  { %v695_v58 = vadd.f32 1.0, %v2259_v56 }
 0xee6   :  { %2260 = vrcp.f32 %v695_v58 }
 0xef0   :  { %v2261_v15 = vpop.eup %2260 }
 0xef1   :  { %v699_v61 = vmul.f32 %v2261_v15, %v637_v42 }
 0xf54   :  { %v702_v59 = vpop.permute.xlu0 %701 }
 0xf55   :  { %v704_v60 = vmul.f32 %v2261_v15, %v702_v59 }
 0xf57   :  { %706 = vrot.lane.b32.xlu1 %v704_v60, %s2404_s12 }
 0xfc9   :  { %v707_v62 = vpop.permute.xlu1 %706 }
 0xfca   :  { %v709_v63 = vadd.f32 %v707_v62, %v699_v61 }
 0xfcc   :  { %2262 = vtanh.f32 %v709_v63 }
 0xfd6   :  { %v2263_v0 = vpop.eup %2262 }
 0xfd7   :  { %712 = vrot.lane.b32.xlu0 %v2263_v0, %s2414_s3 }
0x1049   :  { %v713_v2 = vpop.permute.xlu0 %712 }
0x104a   :  { %v2611_v3 = vmul.f32 %v2261_v15, %v713_v2 }
0x104c   :  { %v716_v5 = vpack.c.bf16 %v2611_v3, %v2611_v3  ;;  %v885_v58 = vcombine.low %v2598_v45, %v2611_v3 }
0x104e   :  { %718 = vrot.lane.b32.xlu1 %v716_v5, %s2415_s8  ;;  %v893_v60 = vrot.slane %v885_v58, %v2491_v8 }
0x10c0   :  { %v719_v6 = vpop.permute.xlu1 %718 }
0x10c1   :  { %2126 = vmatmul.mubr.msk.bf16.vlgmr.msra.gmra.mrb[12].mxu0 %vm283_vm3, %v719_v6 }
0x10c2   :  { %2137 = vmatprep.mubr.msk.bf16.mxu0 %vm2409_vm0, %v2408_v1  ;;  %2136 = vmatpush3.bf16.msra.mxu0 %v919_v53 }
0x10c3   :  { %2147 = vmatprep.subr.bf16.mxu0 %v2408_v1 }
0x1194   :  { %v757_v10 = vpop.f32.mrb[12].mxu0 }
0x1195   :  { %v763_v12 = vadd.f32 %v757_v10, %v272_v9  ;;  %v2127_v13 = vpop.f32.mrb[13].mxu0 }
0x1196   :  { %v760_v14 = vpop.f32.mrb[14].mxu0 }
0x1197   :  { %2264 = vtanh.f32 %v763_v12  ;;  %v2128_v16 = vpop.f32.mrb[15].mxu0  ;;  %v2016_v18 = vmul.f32 -1.442695, %v763_v12 }
0x1199   :  { %2266 = vpow2.f32 %v2016_v18 }
0x11a1   :  { %v2265_v17 = vpop.eup %2264 }
0x11a2   :  { %773 = vrot.lane.b32.xlu0 %v2265_v17, %s2413_s30 }
0x11a3   :  { %v2267_v19 = vpop.eup %2266 }
0x11a4   :  { %v767_v20 = vadd.f32 1.0, %v2267_v19 }
0x11a6   :  { %2268 = vrcp.f32 %v767_v20 }
0x11b0   :  { %v2269_v21 = vpop.eup %2268 }
0x11b1   :  { %v771_v57 = vmul.f32 %v2269_v21, %v709_v63 }
0x1214   :  { %v774_v22 = vpop.permute.xlu0 %773 }
0x1215   :  { %v776_v26 = vmul.f32 %v2269_v21, %v774_v22 }
0x1217   :  { %778 = vrot.lane.b32.xlu1 %v776_v26, %s2404_s12 }
0x1289   :  { %v779_v11 = vpop.permute.xlu1 %778 }
0x128a   :  { %v781_v28 = vadd.f32 %v779_v11, %v771_v57 }
0x128c   :  { %2270 = vtanh.f32 %v781_v28 }
0x1296   :  { %v2271_v29 = vpop.eup %2270 }
0x1297   :  { %784 = vrot.lane.b32.xlu0 %v2271_v29, %s2414_s3 }
0x1309   :  { %v785_v30 = vpop.permute.xlu0 %784 }
0x130a   :  { %v787_v31 = vmul.f32 %v2269_v21, %v785_v30 }
0x130c   :  { %v788_v32 = vpack.c.bf16 %v787_v31, %v787_v31 }
0x130e   :  { %790 = vrot.lane.b32.xlu1 %v788_v32, %s2415_s8 }
0x1380   :  { %v791_v33 = vpop.permute.xlu1 %790 }
0x1381   :  { %2132 = vmatmul.mubr.msk.bf16.vlgmr.msra.gmra.mrb[16].mxu1 %vm283_vm3, %v791_v33 }
0x1382   :  { %2143 = vmatprep.mubr.msk.bf16.mxu1 %vm2409_vm0, %v2408_v1  ;;  %2142 = vmatpush3.bf16.msra.mxu1 %v2639_v54 }
0x1383   :  { %2153 = vmatprep.subr.bf16.mxu1 %v2408_v1 }
0x1389   :  { %2144 = vmatmul.mubr.bf16.vlgmr.msra.gmra.mrb[20].mxu1 %v2412_v27 }
0x138a   :  { %2154 = vmatpush3.bf16.msra.mxu1 %v2639_v54  ;;  %2155 = vmatprep.mubr.msk.bf16.mxu1 %vm2409_vm0, %v2408_v1 }
0x138b   :  { %2165 = vmatprep.subr.bf16.mxu1 %v2408_v1 }
0x1454   :  { %v829_v35 = vpop.f32.mrb[16].mxu1 }
0x1455   :  { %v835_v36 = vadd.f32 %v829_v35, %v274_v34  ;;  %v2133_v37 = vpop.f32.mrb[17].mxu1 }
0x1456   :  { %v832_v38 = vpop.f32.mrb[18].mxu1 }
0x1457   :  { %2272 = vtanh.f32 %v835_v36  ;;  %v2134_v39 = vpop.f32.mrb[19].mxu1  ;;  %v2018_v41 = vmul.f32 -1.442695, %v835_v36 }
0x1459   :  { %2274 = vpow2.f32 %v2018_v41 }
0x145c   :  { %v1043_v45 = vpop.f32.mrb[20].mxu1 }
0x145d   :  { %v2145_v0 = vpop.f32.mrb[21].mxu1 }
0x145e   :  { %v1046_v2 = vpop.f32.mrb[22].mxu1 }
0x145f   :  { %v2146_v3 = vpop.f32.mrb[23].mxu1 }
0x1461   :  { %v2273_v40 = vpop.eup %2272 }
0x1462   :  { %845 = vrot.lane.b32.xlu0 %v2273_v40, %s2413_s30 }
0x1463   :  { %v2275_v42 = vpop.eup %2274 }
0x1464   :  { %v839_v43 = vadd.f32 1.0, %v2275_v42 }
0x1466   :  { %2276 = vrcp.f32 %v839_v43 }
0x1470   :  { %v2277_v44 = vpop.eup %2276 }
0x1471   :  { %v843_v48 = vmul.f32 %v2277_v44, %v781_v28 }
0x14d4   :  { %v846_v46 = vpop.permute.xlu0 %845 }
0x14d5   :  { %v848_v47 = vmul.f32 %v2277_v44, %v846_v46 }
0x14d7   :  { %850 = vrot.lane.b32.xlu1 %v848_v47, %s2404_s12 }
0x1549   :  { %v851_v49 = vpop.permute.xlu1 %850 }
0x154a   :  { %v853_v50 = vadd.f32 %v851_v49, %v843_v48  ;;  %v2416_v49 = vmov 1966171168  }
0x154c   :  { %2278 = vtanh.f32 %v853_v50  ;;  %v1580_v50 = vunpack.c.l.s4 %v2416_v49 }
0x154e   :  { %v1581_v51 = vunpack.c.0.s8 %v1580_v50 }
0x1550   :  { %v2685_v52 = vsub.s32 %v1581_v51, %v2486_v4 }
0x1556   :  { %v2279_v55 = vpop.eup %2278 }
0x1557   :  { %856 = vrot.lane.b32.xlu0 %v2279_v55, %s2414_s3  ;;  %v2688_v55 = vsub.s32 0, %v2486_v4 }
0x15c9   :  { %v857_v56 = vpop.permute.xlu0 %856 }
0x15ca   :  { %v859_v15 = vmul.f32 %v2277_v44, %v857_v56 }
0x15cc   :  { %v886_v59 = vcombine.low %v787_v31, %v859_v15 }
0x15ce   :  { %v900_v61 = vrot.slane %v886_v59, %v2491_v8 }
0x15d0   :  { %v901_v62 = vcombine.low %v893_v60, %v900_v61 }
0x15d2   :  { %v904_v27 = vpack.c.bf16 %v901_v62, %v884_v25 }
0x15d4   :  { %913 = vrot.lane.b32.xlu1 %v904_v27, %s2415_s8 }
0x1646   :  { %v914_v63 = vpop.permute.xlu1 %913 }
0x1647   :  { %2138 = vmatmul.mubr.msk.bf16.vlgmr.msra.gmra.mrb[16].mxu0 %vm283_vm3, %v914_v63 }
0x1648   :  { %2148 = vmatpush3.bf16.msra.mxu0 %v2639_v54  ;;  %2149 = vmatprep.mubr.msk.bf16.mxu0 %vm2409_vm0, %v2408_v1 }
0x1649   :  { %2159 = vmatprep.subr.bf16.mxu0 %v2408_v1 }
0x171a   :  { %v955_v24 = vpop.f32.mrb[16].mxu0 }
0x171b   :  { %v2666_v25 = vadd.f32 %v2019_v23, %v955_v24  ;;  %v2139_v5 = vpop.f32.mrb[17].mxu0 }
0x171c   :  { %v958_v6 = vpop.f32.mrb[18].mxu0 }
0x171d   :  { %v971_v7 = vrot.slane %v2666_v25, %v2491_v8  ;;  %v2670_v9 = vadd.f32 %v2019_v23, %v958_v6  ;;  %v2140_v10 = vpop.f32.mrb[19].mxu0  ;;  %v964_v4 = vcombine.high %v2666_v25, %v2666_v25 }
0x171f   :  { %v1049_v12 = vadd.f32 %v1043_v45, %v971_v7  ;;  %v979_v31 = vcombine.high %v971_v7, %v971_v7  ;;  %v978_v2 = vrot.slane %v964_v4, %v2491_v8 }
0x1721   :  { %2280 = vtanh.f32 %v1049_v12  ;;  %v2021_v14 = vmul.f32 -1.442695, %v1049_v12 }
0x1723   :  { %2282 = vpow2.f32 %v2021_v14 }
0x172b   :  { %v2281_v13 = vpop.eup %2280 }
0x172c   :  { %1059 = vrot.lane.b32.xlu0 %v2281_v13, %s2413_s30 }
0x172d   :  { %v2283_v16 = vpop.eup %2282 }
0x172e   :  { %v1053_v17 = vadd.f32 1.0, %v2283_v16 }
0x1730   :  { %2284 = vrcp.f32 %v1053_v17 }
0x173a   :  { %v2285_v18 = vpop.eup %2284 }
0x173b   :  { %v1057_v21 = vmul.f32 0.0, %v2285_v18 }
0x179e   :  { %v1060_v19 = vpop.permute.xlu0 %1059 }
0x179f   :  { %v1062_v20 = vmul.f32 %v2285_v18, %v1060_v19 }
0x17a1   :  { %1064 = vrot.lane.b32.xlu1 %v1062_v20, %s2404_s12 }
0x1813   :  { %v1065_v22 = vpop.permute.xlu1 %1064 }
0x1814   :  { %v1067_v26 = vadd.f32 %v1065_v22, %v1057_v21 }
0x1816   :  { %2286 = vtanh.f32 %v1067_v26 }
0x1820   :  { %v2287_v57 = vpop.eup %2286 }
0x1821   :  { %1070 = vrot.lane.b32.xlu0 %v2287_v57, %s2414_s3 }
0x1893   :  { %v1071_v11 = vpop.permute.xlu0 %1070 }
0x1894   :  { %v1073_v28 = vmul.f32 %v2285_v18, %v1071_v11 }
0x1896   :  { %v1074_v29 = vpack.c.bf16 %v1073_v28, %v1073_v28  ;;  %v1585_v58 = vrot.slane %v1073_v28, %v2685_v52 }
0x1898   :  { %1076 = vrot.lane.b32.xlu1 %v1074_v29, %s2415_s8  ;;  %v1586_v62 = vcombine.high %v1585_v58, %v1585_v58 }
0x190a   :  { %v1077_v30 = vpop.permute.xlu1 %1076 }
0x190b   :  { %2150 = vmatmul.mubr.msk.bf16.vlgmr.msra.gmra.mrb[20].mxu0 %vm283_vm3, %v1077_v30 }
0x190c   :  { %2160 = vmatpush3.bf16.msra.mxu0 %v2639_v54  ;;  %2161 = vmatprep.mubr.msk.bf16.mxu0 %vm2409_vm0, %v2408_v1 }
0x190d   :  { %2171 = vmatprep.subr.bf16.mxu0 %v2408_v1 }
0x19de   :  { %v1115_v32 = vpop.f32.mrb[20].mxu0 }
0x19df   :  { %v1121_v33 = vadd.f32 %v1115_v32, %v979_v31  ;;  %v2151_v34 = vpop.f32.mrb[21].mxu0 }
0x19e0   :  { %v1118_v35 = vpop.f32.mrb[22].mxu0 }
0x19e1   :  { %2288 = vtanh.f32 %v1121_v33  ;;  %v2152_v36 = vpop.f32.mrb[23].mxu0  ;;  %v2023_v38 = vmul.f32 -1.442695, %v1121_v33  ;;  %v980_v33 = vcombine.high %v978_v2, %v978_v2 }
0x19e3   :  { %2290 = vpow2.f32 %v2023_v38 }
0x19eb   :  { %v2289_v37 = vpop.eup %2288 }
0x19ec   :  { %1131 = vrot.lane.b32.xlu0 %v2289_v37, %s2413_s30 }
0x19ed   :  { %v2291_v39 = vpop.eup %2290 }
0x19ee   :  { %v1125_v40 = vadd.f32 1.0, %v2291_v39 }
0x19f0   :  { %2292 = vrcp.f32 %v1125_v40 }
0x19fa   :  { %v2293_v41 = vpop.eup %2292 }
0x19fb   :  { %v1129_v44 = vmul.f32 %v2293_v41, %v1067_v26 }
0x1a5e   :  { %v1132_v42 = vpop.permute.xlu0 %1131 }
0x1a5f   :  { %v1134_v43 = vmul.f32 %v2293_v41, %v1132_v42 }
0x1a61   :  { %1136 = vrot.lane.b32.xlu1 %v1134_v43, %s2404_s12 }
0x1ad3   :  { %v1137_v46 = vpop.permute.xlu1 %1136 }
0x1ad4   :  { %v1139_v47 = vadd.f32 %v1137_v46, %v1129_v44 }
0x1ad6   :  { %2294 = vtanh.f32 %v1139_v47 }
0x1ae0   :  { %v2295_v48 = vpop.eup %2294 }
0x1ae1   :  { %1142 = vrot.lane.b32.xlu0 %v2295_v48, %s2414_s3 }
0x1b53   :  { %v1143_v53 = vpop.permute.xlu0 %1142 }
0x1b54   :  { %v1145_v56 = vmul.f32 %v2293_v41, %v1143_v53 }
0x1b56   :  { %v1146_v15 = vpack.c.bf16 %v1145_v56, %v1145_v56  ;;  %v1596_v59 = vrot.slane %v1145_v56, %v2685_v52 }
0x1b58   :  { %v1597_v60 = vcombine.high %v1596_v59, %v1596_v59  ;;  %v1655_v61 = vrot.slane %v1596_v59, %v2688_v55  ;;  %1148 = vrot.lane.b32.xlu1 %v1146_v15, %s2415_s8 }
0x1b5a   :  { %v1659_v27 = vrot.slane %v1597_v60, %v2688_v55  ;;  %v1723_v63 = vsel %vm1722_vm4, %v1585_v58, %v1655_v61 }
0x1b5c   :  { %v1724_v45 = vsel %vm1722_vm4, %v1586_v62, %v1659_v27 }
0x1bca   :  { %v1149_v0 = vpop.permute.xlu1 %1148 }
0x1bcb   :  { %2156 = vmatmul.mubr.msk.bf16.vlgmr.msra.gmra.mrb[24].mxu1 %vm283_vm3, %v1149_v0 }
0x1bcc   :  { %2166 = vmatpush3.bf16.msra.mxu1 %v2639_v54  ;;  %2167 = vmatprep.mubr.msk.bf16.mxu1 %vm2409_vm0, %v2408_v1 }
0x1bcd   :  { %2177 = vmatprep.subr.bf16.mxu1 %v2408_v1 }
0x1c9e   :  { %v1187_v3 = vpop.f32.mrb[24].mxu1 }
0x1c9f   :  { %v1193_v23 = vadd.f32 %v1187_v3, %v978_v2  ;;  %v2157_v24 = vpop.f32.mrb[25].mxu1 }
0x1ca0   :  { %v1190_v5 = vpop.f32.mrb[26].mxu1 }
0x1ca1   :  { %2296 = vtanh.f32 %v1193_v23  ;;  %v2158_v6 = vpop.f32.mrb[27].mxu1  ;;  %v2025_v10 = vmul.f32 -1.442695, %v1193_v23 }
0x1ca3   :  { %2298 = vpow2.f32 %v2025_v10 }
0x1cab   :  { %v2297_v7 = vpop.eup %2296 }
0x1cac   :  { %1203 = vrot.lane.b32.xlu0 %v2297_v7, %s2413_s30 }
0x1cad   :  { %v2299_v12 = vpop.eup %2298 }
0x1cae   :  { %v1197_v13 = vadd.f32 1.0, %v2299_v12 }
0x1cb0   :  { %2300 = vrcp.f32 %v1197_v13 }
0x1cba   :  { %v2301_v14 = vpop.eup %2300 }
0x1cbb   :  { %v1201_v25 = vmul.f32 %v2301_v14, %v1139_v47 }
0x1d1e   :  { %v1204_v16 = vpop.permute.xlu0 %1203 }
0x1d1f   :  { %v1206_v17 = vmul.f32 %v2301_v14, %v1204_v16 }
0x1d21   :  { %1208 = vrot.lane.b32.xlu1 %v1206_v17, %s2404_s12 }
0x1d93   :  { %v1209_v18 = vpop.permute.xlu1 %1208 }
0x1d94   :  { %v1211_v19 = vadd.f32 %v1209_v18, %v1201_v25 }
0x1d96   :  { %2302 = vtanh.f32 %v1211_v19 }
0x1da0   :  { %v2303_v20 = vpop.eup %2302 }
0x1da1   :  { %1214 = vrot.lane.b32.xlu0 %v2303_v20, %s2414_s3 }
0x1e13   :  { %v1215_v21 = vpop.permute.xlu0 %1214 }
0x1e14   :  { %v1217_v22 = vmul.f32 %v2301_v14, %v1215_v21 }
0x1e16   :  { %v1218_v26 = vpack.c.bf16 %v1217_v22, %v1217_v22  ;;  %v1605_v57 = vrot.slane %v1217_v22, %v2685_v52 }
0x1e18   :  { %v1606_v11 = vcombine.high %v1605_v57, %v1605_v57  ;;  %v1665_v28 = vrot.slane %v1605_v57, %v2688_v55  ;;  %1220 = vrot.lane.b32.xlu1 %v1218_v26, %s2415_s8 }
0x1e1a   :  { %v1669_v29 = vrot.slane %v1606_v11, %v2688_v55  ;;  %v1726_v30 = vsel %vm1725_vm5, %v1723_v63, %v1665_v28  ;;  %v988_v63 = vrot.slane %v2670_v9, %v2491_v8 }
0x1e1c   :  { %v1727_v31 = vsel %vm1725_vm5, %v1724_v45, %v1669_v29  ;;  %v996_v29 = vcombine.high %v988_v63, %v988_v63 }
0x1e8a   :  { %v1221_v32 = vpop.permute.xlu1 %1220 }
0x1e8b   :  { %2162 = vmatmul.mubr.msk.bf16.vlgmr.msra.gmra.mrb[24].mxu0 %vm283_vm3, %v1221_v32 }
0x1e8c   :  { %2172 = vmatpush3.bf16.msra.mxu0 %v2639_v54  ;;  %2173 = vmatprep.mubr.msk.bf16.mxu0 %vm2409_vm0, %v2408_v1 }
0x1e8d   :  { %2183 = vmatprep.subr.bf16.mxu0 %v2408_v1 }
0x1f5e   :  { %v1259_v34 = vpop.f32.mrb[24].mxu0 }
0x1f5f   :  { %v1265_v35 = vadd.f32 %v1259_v34, %v980_v33  ;;  %v2163_v36 = vpop.f32.mrb[25].mxu0 }
0x1f60   :  { %v1262_v37 = vpop.f32.mrb[26].mxu0 }
0x1f61   :  { %2304 = vtanh.f32 %v1265_v35  ;;  %v2164_v38 = vpop.f32.mrb[27].mxu0  ;;  %v2027_v40 = vmul.f32 -1.442695, %v1265_v35 }
0x1f63   :  { %2306 = vpow2.f32 %v2027_v40 }
0x1f6b   :  { %v2305_v39 = vpop.eup %2304 }
0x1f6c   :  { %1275 = vrot.lane.b32.xlu0 %v2305_v39, %s2413_s30 }
0x1f6d   :  { %v2307_v41 = vpop.eup %2306 }
0x1f6e   :  { %v1269_v42 = vadd.f32 1.0, %v2307_v41 }
0x1f70   :  { %2308 = vrcp.f32 %v1269_v42 }
0x1f7a   :  { %v2309_v43 = vpop.eup %2308 }
0x1f7b   :  { %v1273_v47 = vmul.f32 %v2309_v43, %v1211_v19 }
0x1fde   :  { %v1276_v44 = vpop.permute.xlu0 %1275 }
0x1fdf   :  { %v1278_v46 = vmul.f32 %v2309_v43, %v1276_v44 }
0x1fe1   :  { %1280 = vrot.lane.b32.xlu1 %v1278_v46, %s2404_s12 }
0x2053   :  { %v1281_v48 = vpop.permute.xlu1 %1280 }
0x2054   :  { %v1283_v49 = vadd.f32 %v1281_v48, %v1273_v47 }
0x2056   :  { %2310 = vtanh.f32 %v1283_v49 }
0x2060   :  { %v2311_v50 = vpop.eup %2310 }
0x2061   :  { %1286 = vrot.lane.b32.xlu0 %v2311_v50, %s2414_s3 }
0x20d3   :  { %v1287_v51 = vpop.permute.xlu0 %1286 }
0x20d4   :  { %v1289_v53 = vmul.f32 %v2309_v43, %v1287_v51 }
0x20d6   :  { %v1290_v56 = vpack.c.bf16 %v1289_v53, %v1289_v53  ;;  %v1614_v58 = vrot.slane %v1289_v53, %v2685_v52 }
0x20d8   :  { %v1615_v15 = vcombine.high %v1614_v58, %v1614_v58  ;;  %v1675_v59 = vrot.slane %v1614_v58, %v2688_v55  ;;  %1292 = vrot.lane.b32.xlu1 %v1290_v56, %s2415_s8 }
0x20da   :  { %v1679_v60 = vrot.slane %v1615_v15, %v2688_v55  ;;  %v1729_v61 = vsel %vm1728_vm6, %v1726_v30, %v1675_v59  ;;  %v2352_v59 = vld [vmem:[#allocation2] sm:$0xff] }
0x20dc   :  { %v1730_v62 = vsel %vm1728_vm6, %v1727_v31, %v1679_v60  ;;  %v981_v60 = vcombine.high %v2670_v9, %v2670_v9 }
0x214a   :  { %v1293_v27 = vpop.permute.xlu1 %1292 }
0x214b   :  { %2168 = vmatmul.mubr.msk.bf16.vlgmr.msra.gmra.mrb[28].mxu1 %vm283_vm3, %v1293_v27 }
0x214c   :  { %2178 = vmatpush3.bf16.msra.mxu1 %v2639_v54  ;;  %2179 = vmatprep.mubr.msk.bf16.mxu1 %vm2409_vm0, %v2408_v1 }
0x214d   :  { %2189 = vmatprep.subr.mxu1 %v2408_v1 }
0x221e   :  { %v1331_v45 = vpop.f32.mrb[28].mxu1 }
0x221f   :  { %v1337_v0 = vadd.f32 %v1331_v45, %v988_v63  ;;  %v2169_v4 = vpop.f32.mrb[29].mxu1 }
0x2220   :  { %v1334_v2 = vpop.f32.mrb[30].mxu1 }
0x2221   :  { %2312 = vtanh.f32 %v1337_v0  ;;  %v2170_v3 = vpop.f32.mrb[31].mxu1  ;;  %v2029_v24 = vmul.f32 -1.442695, %v1337_v0 }
0x2223   :  { %2314 = vpow2.f32 %v2029_v24 }
0x222b   :  { %v2313_v23 = vpop.eup %2312 }
0x222c   :  { %1347 = vrot.lane.b32.xlu0 %v2313_v23, %s2413_s30 }
0x222d   :  { %v2315_v5 = vpop.eup %2314 }
0x222e   :  { %v1341_v6 = vadd.f32 1.0, %v2315_v5 }
0x2230   :  { %2316 = vrcp.f32 %v1341_v6 }
0x223a   :  { %v2317_v7 = vpop.eup %2316 }
0x223b   :  { %v1345_v13 = vmul.f32 %v2317_v7, %v1283_v49 }
0x229e   :  { %v1348_v10 = vpop.permute.xlu0 %1347 }
0x229f   :  { %v1350_v12 = vmul.f32 %v2317_v7, %v1348_v10 }
0x22a1   :  { %1352 = vrot.lane.b32.xlu1 %v1350_v12, %s2404_s12 }
0x2313   :  { %v1353_v14 = vpop.permute.xlu1 %1352 }
0x2314   :  { %v1355_v16 = vadd.f32 %v1353_v14, %v1345_v13 }
0x2316   :  { %2318 = vtanh.f32 %v1355_v16 }
0x2320   :  { %v2319_v17 = vpop.eup %2318 }
0x2321   :  { %1358 = vrot.lane.b32.xlu0 %v2319_v17, %s2414_s3 }
0x2393   :  { %v1359_v25 = vpop.permute.xlu0 %1358 }
0x2394   :  { %v1361_v18 = vmul.f32 %v2317_v7, %v1359_v25 }
0x2396   :  { %v1362_v19 = vpack.c.bf16 %v1361_v18, %v1361_v18  ;;  %v1623_v20 = vrot.slane %v1361_v18, %v2685_v52 }
0x2398   :  { %v1624_v21 = vcombine.high %v1623_v20, %v1623_v20  ;;  %v1685_v22 = vrot.slane %v1623_v20, %v2688_v55  ;;  %1364 = vrot.lane.b32.xlu1 %v1362_v19, %s2415_s8 }
0x239a   :  { %v1689_v26 = vrot.slane %v1624_v21, %v2688_v55  ;;  %v1731_v57 = vsel %vm287_vm1, %v1729_v61, %v1685_v22  ;;  %v995_v61 = vrot.slane %v981_v60, %v2491_v8  ;;  %v2353_v22 = vld [vmem:[#allocation2 + $0x8] sm:$0xff] }
0x239c   :  { %v1732_v11 = vsel %vm287_vm1, %v1730_v62, %v1689_v26  ;;  %v997_v26 = vcombine.high %v995_v61, %v995_v61 }
0x240a   :  { %v1365_v28 = vpop.permute.xlu1 %1364 }
0x240b   :  { %2174 = vmatmul.mubr.msk.bf16.vlgmr.msra.gmra.mrb[28].mxu0 %vm283_vm3, %v1365_v28 }
0x240c   :  { %2184 = vmatpush3.bf16.msra.mxu0 %v2639_v54  ;;  %2185 = vmatprep.mubr.msk.bf16.mxu0 %vm2409_vm0, %v2408_v1 }
0x240d   :  { %2194 = vmatprep.subr.mxu0 %v2408_v1 }
0x24de   :  { %v1403_v30 = vpop.f32.mrb[28].mxu0 }
0x24df   :  { %v1409_v31 = vadd.f32 %v1403_v30, %v996_v29  ;;  %v2175_v32 = vpop.f32.mrb[29].mxu0 }
0x24e0   :  { %v1406_v33 = vpop.f32.mrb[30].mxu0 }
0x24e1   :  { %2320 = vtanh.f32 %v1409_v31  ;;  %v2176_v34 = vpop.f32.mrb[31].mxu0  ;;  %v2031_v36 = vmul.f32 -1.442695, %v1409_v31 }
0x24e3   :  { %2322 = vpow2.f32 %v2031_v36 }
0x24eb   :  { %v2321_v35 = vpop.eup %2320 }
0x24ec   :  { %1419 = vrot.lane.b32.xlu0 %v2321_v35, %s2413_s30 }
0x24ed   :  { %v2323_v37 = vpop.eup %2322 }
0x24ee   :  { %v1413_v38 = vadd.f32 1.0, %v2323_v37 }
0x24f0   :  { %2324 = vrcp.f32 %v1413_v38 }
0x24fa   :  { %v2325_v54 = vpop.eup %2324 }
0x24fb   :  { %v1417_v41 = vmul.f32 %v2325_v54, %v1355_v16 }
0x255e   :  { %v1420_v39 = vpop.permute.xlu0 %1419 }
0x255f   :  { %v1422_v40 = vmul.f32 %v2325_v54, %v1420_v39 }
0x2561   :  { %1424 = vrot.lane.b32.xlu1 %v1422_v40, %s2404_s12 }
0x25d3   :  { %v1425_v42 = vpop.permute.xlu1 %1424 }
0x25d4   :  { %v1427_v43 = vadd.f32 %v1425_v42, %v1417_v41 }
0x25d6   :  { %2326 = vtanh.f32 %v1427_v43 }
0x25e0   :  { %v2327_v44 = vpop.eup %2326 }
0x25e1   :  { %1430 = vrot.lane.b32.xlu0 %v2327_v44, %s2414_s3 }
0x2653   :  { %v1431_v46 = vpop.permute.xlu0 %1430 }
0x2654   :  { %v1433_v47 = vmul.f32 %v2325_v54, %v1431_v46 }
0x2656   :  { %v1434_v48 = vpack.c.bf16 %v1433_v47, %v1433_v47  ;;  %v1632_v49 = vrot.slane %v1433_v47, %v2685_v52 }
0x2658   :  { %v1633_v50 = vcombine.high %v1632_v49, %v1632_v49  ;;  %v1695_v51 = vrot.slane %v1632_v49, %v2688_v55  ;;  %1436 = vrot.lane.b32.xlu1 %v1434_v48, %s2415_s8 }
0x265a   :  { %v1699_v53 = vrot.slane %v1633_v50, %v2688_v55  ;;  %v1734_v56 = vsel %vm1733_vm7, %v1731_v57, %v1695_v51 }
0x265c   :  { %v1735_v58 = vsel %vm1733_vm7, %v1732_v11, %v1699_v53 }
0x26ca   :  { %v1437_v15 = vpop.permute.xlu1 %1436 }
0x26cb   :  { %2180 = vmatmul.mubr.msk.bf16.vlgmr.msra.gmra.mrb[32].mxu1 %vm283_vm3, %v1437_v15 }
0x26cc   :  { %2190 = vmatpush3.msra.mxu1 %v2352_v59  ;;  %2191 = vmatprep.mubr.msk.f32.mxu1 %vm2409_vm0, %v2408_v1 }
0x279e   :  { %v1475_v62 = vpop.f32.mrb[32].mxu1 }
0x279f   :  { %v1481_v27 = vadd.f32 %v1475_v62, %v995_v61  ;;  %v2181_v63 = vpop.f32.mrb[33].mxu1 }
0x27a0   :  { %v1478_v45 = vpop.f32.mrb[34].mxu1 }
0x27a1   :  { %2328 = vtanh.f32 %v1481_v27  ;;  %v2182_v0 = vpop.f32.mrb[35].mxu1  ;;  %v2033_v2 = vmul.f32 -1.442695, %v1481_v27 }
0x27a3   :  { %2330 = vpow2.f32 %v2033_v2 }
0x27ab   :  { %v2329_v4 = vpop.eup %2328 }
0x27ac   :  { %1491 = vrot.lane.b32.xlu0 %v2329_v4, %s2413_s30 }
0x27ad   :  { %v2331_v3 = vpop.eup %2330 }
0x27ae   :  { %v1485_v23 = vadd.f32 1.0, %v2331_v3 }
0x27b0   :  { %2332 = vrcp.f32 %v1485_v23 }
0x27ba   :  { %v2333_v24 = vpop.eup %2332 }
0x27bb   :  { %v1489_v8 = vmul.f32 %v2333_v24, %v1427_v43 }
0x281e   :  { %v1492_v5 = vpop.permute.xlu0 %1491 }
0x281f   :  { %v1494_v6 = vmul.f32 %v2333_v24, %v1492_v5 }
0x2821   :  { %1496 = vrot.lane.b32.xlu1 %v1494_v6, %s2404_s12 }
0x2893   :  { %v1497_v9 = vpop.permute.xlu1 %1496 }
0x2894   :  { %v1499_v7 = vadd.f32 %v1497_v9, %v1489_v8 }
0x2896   :  { %2334 = vtanh.f32 %v1499_v7 }
0x28a0   :  { %v2335_v10 = vpop.eup %2334 }
0x28a1   :  { %1502 = vrot.lane.b32.xlu0 %v2335_v10, %s2414_s3 }
0x2913   :  { %v1503_v12 = vpop.permute.xlu0 %1502 }
0x2914   :  { %v1505_v13 = vmul.f32 %v2333_v24, %v1503_v12 }
0x2916   :  { %v1506_v14 = vpack.c.bf16 %v1505_v13, %v1505_v13  ;;  %v1641_v16 = vrot.slane %v1505_v13, %v2685_v52 }
0x2918   :  { %v1642_v17 = vcombine.high %v1641_v16, %v1641_v16  ;;  %v1705_v25 = vrot.slane %v1641_v16, %v2688_v55  ;;  %1508 = vrot.lane.b32.xlu1 %v1506_v14, %s2415_s8 }
0x291a   :  { %v1709_v18 = vrot.slane %v1642_v17, %v2688_v55  ;;  %v1737_v19 = vsel %vm1736_vm8, %v1734_v56, %v1705_v25 }
0x291c   :  { %v1738_v20 = vsel %vm1736_vm8, %v1735_v58, %v1709_v18 }
0x298a   :  { %v1509_v21 = vpop.permute.xlu1 %1508 }
0x298b   :  { %2186 = vmatmul.mubr.msk.bf16.vlgmr.msra.gmra.mrb[32].mxu0 %vm283_vm3, %v1509_v21 }
0x298c   :  { %2195 = vmatpush3.msra.mxu0 %v2353_v22  ;;  %2196 = vmatprep.mubr.msk.f32.mxu0 %vm2409_vm0, %v2408_v1 }
0x2a5e   :  { %v1547_v57 = vpop.f32.mrb[32].mxu0 }
0x2a5f   :  { %v1553_v11 = vadd.f32 %v1547_v57, %v997_v26  ;;  %v2187_v28 = vpop.f32.mrb[33].mxu0 }
0x2a60   :  { %v1550_v29 = vpop.f32.mrb[34].mxu0 }
0x2a61   :  { %2336 = vtanh.f32 %v1553_v11  ;;  %v2188_v30 = vpop.f32.mrb[35].mxu0  ;;  %v2035_v32 = vmul.f32 -1.442695, %v1553_v11 }
0x2a63   :  { %2338 = vpow2.f32 %v2035_v32 }
0x2a6b   :  { %v2337_v31 = vpop.eup %2336 }
0x2a6c   :  { %1563 = vrot.lane.b32.xlu0 %v2337_v31, %s2413_s30 }
0x2a6d   :  { %v2339_v33 = vpop.eup %2338 }
0x2a6e   :  { %v1557_v34 = vadd.f32 1.0, %v2339_v33 }
0x2a70   :  { %2340 = vrcp.f32 %v1557_v34 }
0x2a7a   :  { %v2341_v35 = vpop.eup %2340 }
0x2a7b   :  { %v1561_v1 = vmul.f32 %v2341_v35, %v1499_v7 }
0x2ade   :  { %v1564_v36 = vpop.permute.xlu0 %1563 }
0x2adf   :  { %v1566_v37 = vmul.f32 %v2341_v35, %v1564_v36 }
0x2ae1   :  { %1568 = vrot.lane.b32.xlu1 %v1566_v37, %s2404_s12 }
0x2b53   :  { %v1569_v38 = vpop.permute.xlu1 %1568 }
0x2b54   :  { %v1571_v54 = vadd.f32 %v1569_v38, %v1561_v1 }
0x2b56   :  { %2342 = vtanh.f32 %v1571_v54 }
0x2b60   :  { %v2343_v39 = vpop.eup %2342 }
0x2b61   :  { %1574 = vrot.lane.b32.xlu0 %v2343_v39, %s2414_s3 }
0x2bd3   :  { %v1575_v40 = vpop.permute.xlu0 %1574 }
0x2bd4   :  { %v1577_v41 = vmul.f32 %v2341_v35, %v1575_v40 }
0x2bd6   :  { %v1650_v42 = vrot.slane %v1577_v41, %v2685_v52 }
0x2bd8   :  { %v1651_v43 = vcombine.high %v1650_v42, %v1650_v42  ;;  %v1715_v44 = vrot.slane %v1650_v42, %v2688_v55 }
0x2bda   :  { %v1740_v46 = vsel %vm1739_vm9, %v1737_v19, %v1715_v44  ;;  %v1719_v47 = vrot.slane %v1651_v43, %v2688_v55 }
0x2bdb   :  { %v1743_v48 = vsel %vm1742_vm10, %v1740_v46, -inf }
0x2bdc   :  { %1744 = vmax.xlane.f32.xlu1 %v1743_v48  ;;  %v1741_v49 = vsel %vm1739_vm9, %v1738_v20, %v1719_v47 }
0x2bdd   :  { %v1746_v50 = vsel %vm1742_vm10, %v1741_v49, -inf }
0x2bde   :  { %1747 = vmax.xlane.f32.xlu0 %v1746_v50 }
0x2c69   :  { %v1745_v51 = vpop.xlane.xlu1 %1744 }
0x2c6a   :  { %v1749_v53 = vsub.f32 %v1740_v46, %v1745_v51 }
0x2c6b   :  { %v1748_v56 = vpop.xlane.xlu0 %1747 }
0x2c6c   :  { %v1751_v58 = vmul.f32 1.442695, %v1749_v53  ;;  %v1750_v15 = vsub.f32 %v1741_v49, %v1748_v56 }
0x2c6e   :  { %2344 = vpow2.f32 %v1751_v58  ;;  %v1753_v52 = vmul.f32 1.442695, %v1750_v15 }
0x2c70   :  { %2346 = vpow2.f32 %v1753_v52 }
0x2c78   :  { %v2345_v59 = vpop.eup %2344 }
0x2c79   :  { %1757 = vrot.lane.b32.xlu0 %v2345_v59, %s2415_s8 }
0x2c7a   :  { %v2347_v60 = vpop.eup %2346 }
0x2c7b   :  { %1759 = vrot.lane.b32.xlu1 %v2347_v60, %s2415_s8 }
0x2ceb   :  { %v1758_v55 = vpop.permute.xlu0 %1757 }
0x2cec   :  { %v1763_v61 = vsel %vm283_vm3, %v1758_v55, 0.0 }
0x2ced   :  { %v1760_v62 = vpop.permute.xlu1 %1759  ;;  %1764 = vadd.xlane.f32.xlu1 %v1763_v61 }
0x2cee   :  { %v1766_v27 = vsel %vm283_vm3, %v1760_v62, 0.0 }
0x2cef   :  { %1767 = vadd.xlane.f32.xlu0 %v1766_v27 }
0x2d7a   :  { %v1765_v63 = vpop.xlane.xlu1 %1764 }
0x2d7b   :  { %2348 = vrcp.f32 %v1765_v63 }
0x2d7c   :  { %v1768_v45 = vpop.xlane.xlu0 %1767 }
0x2d7d   :  { %2350 = vrcp.f32 %v1768_v45 }
0x2d85   :  { %v2349_v0 = vpop.eup %2348 }
0x2d86   :  { %v1771_v4 = vmul.f32 %v2349_v0, %v2345_v59 }
0x2d87   :  { %v2351_v2 = vpop.eup %2350 }
0x2d88   :  { %1774 = vrot.lane.b32.xlu0 %v1771_v4, %s2415_s8  ;;  %v1772_v3 = vmul.f32 %v2351_v2, %v2347_v60 }
0x2d8a   :  { %1883 = vrot.lane.b32.xlu1 %v1772_v3, %s2415_s8 }
0x2dfa   :  { %v1775_v23 = vpop.permute.xlu0 %1774 }
0x2dfb   :  { %1777 = vxpose.xlu1.b32.start.end [1/1] (short) (narrow) %v1775_v23, 8 }
0x2dfc   :  { %v1884_v24 = vpop.permute.xlu1 %1883 }
0x2dfd   :  { %1886 = vxpose.xlu0.b32.start.end [1/1] (short) (narrow) %v1884_v24, 8 }
0x2e7b   :  { %v1793_v5 = vpop.trf.xlu1 }
0x2e7c   :  { %2192 = vmatmul.mubr.msk.f32.vlgmr.msra.gmra.mrb[36].mxu1 %vm283_vm3, %v1793_v5 }
0x2e7d   :  { %v1902_v6 = vpop.trf.xlu0 }
0x2e7e   :  { %2197 = vmatmul.mubr.msk.f32.vlgmr.msra.gmra.mrb[36].mxu0 %vm283_vm3, %v1902_v6 }
0x2f4f   :  { %v1878_v8 = vpop.f32.mrb[36].mxu1 }
0x2f50   :  { %1992 = vst.msk [vmem:[%s2793_s7 - $0x1] sm:$0xfe] %vm1991_vm11, %v1878_v8  ;;  %v2193_v9 = vpop.f32.mrb[37].mxu1 }
0x2f51   :  { %v1987_v7 = vpop.f32.mrb[36].mxu0 }
0x2f52   :  { %1993 = vst.msk [vmem:[%s2793_s7 + $0x7] sm:$0xfe] %vm1991_vm11, %v1987_v7  ;;  %v2198_v10 = vpop.f32.mrb[37].mxu0 }
0x2f53   :  { %1998 = vsyncpa [#allocation3], 1 }
0x2f54   :  { %1999 = vsyncpa [#allocation5], 1 }

</bundles_post_ra>
